<compile_context>
chip_gen: v7x
topology: tpu7x:2x2x1
jax: 0.10.0
libtpu: 0.0.40
codegen_flags: <defaults>
</compile_context>

<pallas_src>
import functools

import jax
import jax.numpy as jnp
from jax import lax
from jax.experimental import pallas as pl
from jax.experimental.pallas import tpu as pltpu

LN_EPS = 1e-5
NEG_INF = -1e9                       # causal-mask fill (same as -inf post-softmax)
VMEM_LIMIT_BYTES = 48 * 1024 * 1024  # explicit scoped-VMEM limit (fits v5e/v6e/v7x)


# ----------------------------------------------------------------------------
# Resident-weight BlockSpec helper (single-buffered when supported)
# ----------------------------------------------------------------------------
@functools.lru_cache(maxsize=None)
def _buffered_one_supported():
    """Probe whether BlockSpec(pipeline_mode=pl.Buffered(1)) lowers on this JAX."""
    try:
        def _k(x_ref, o_ref):
            o_ref[...] = x_ref[...] + 1.0
        x = jnp.zeros((8, 128), jnp.float32)
        y = pl.pallas_call(
            _k,
            out_shape=jax.ShapeDtypeStruct((8, 128), jnp.float32),
            grid=(2,),
            in_specs=[pl.BlockSpec((8, 128), lambda i: (0, 0),
                                   pipeline_mode=pl.Buffered(1))],
            out_specs=pl.BlockSpec((8, 128), lambda i: (0, 0)),
        )(x)
        jax.block_until_ready(y)
        return True
    except Exception:
        return False


def _resident(shape):
    """Constant-index (grid-resident) operand spec; single-buffered if possible."""
    index_map = lambda *_: (0,) * len(shape)
    if _buffered_one_supported():
        return pl.BlockSpec(shape, index_map, pipeline_mode=pl.Buffered(1))
    return pl.BlockSpec(shape, index_map)


# ----------------------------------------------------------------------------
# In-kernel helpers
# ----------------------------------------------------------------------------
def _layernorm(x, w, b):
    # x: (R, D) f32, w/b: (1, D) f32
    mu = jnp.mean(x, axis=-1, keepdims=True)
    var = jnp.mean((x - mu) ** 2, axis=-1, keepdims=True)
    return (x - mu) * lax.rsqrt(var + LN_EPS) * w + b


# ----------------------------------------------------------------------------
# Kernels
# ----------------------------------------------------------------------------
def layer_kernel(x_ref, ln1w_ref, ln1b_ref, wqkv_ref, bqkv_ref, wo_ref, bo_ref,
                 ln2w_ref, ln2b_ref, w1_ref, b1_ref, w2_ref, b2_ref,
                 o_ref, ctx_ref, *, num_heads, seq_len):
    """One full residual-attention block (attn + MLP) on a (R=Bt*S, D) row block."""
    x = x_ref[...].astype(jnp.float32)                     # (R, D)
    R, D = x.shape
    S = seq_len
    hd = D // num_heads
    scale = hd ** -0.5
    mm = wqkv_ref.dtype                                    # bf16 matmul path

    # ---------------- Attention ----------------
    h = _layernorm(x, ln1w_ref[...], ln1b_ref[...])
    # Fused QKV: one (R, D) @ (D, 3D) matmul, f32 accumulation.
    qkv = jnp.dot(h.astype(mm), wqkv_ref[...],
                  preferred_element_type=jnp.float32) + bqkv_ref[...]
    qkv_bf = qkv.astype(mm)                                # cast hoisted out of loop

    # Causal mask built in-kernel (no HBM mask input).
    row = lax.broadcasted_iota(jnp.int32, (S, S), 0)
    col = lax.broadcasted_iota(jnp.int32, (S, S), 1)
    causal = col <= row

    # Per-(sequence, head) scores / softmax / context.  Contexts are stored
    # into the VMEM ctx scratch so the output projection is ONE (R,D)@(D,D)
    # matmul instead of H small K=hd matmuls.
    nseq = R // S
    for b in range(nseq):
        r0 = b * S
        for hh in range(num_heads):
            c0 = hh * hd
            qh = qkv_bf[r0:r0 + S, c0:c0 + hd]
            kh = qkv_bf[r0:r0 + S, D + c0:D + c0 + hd]
            vh = qkv_bf[r0:r0 + S, 2 * D + c0:2 * D + c0 + hd]

            s = lax.dot_general(qh, kh, (((1,), (1,)), ((), ())),
                                preferred_element_type=jnp.float32) * scale
            s = jnp.where(causal, s, NEG_INF)
            s = s - jnp.max(s, axis=-1, keepdims=True)
            p = jnp.exp(s)
            p = p * pl.reciprocal(jnp.sum(p, axis=-1, keepdims=True), approx=True)

            ctx_h = jnp.dot(p.astype(mm), vh,
                            preferred_element_type=jnp.float32)   # (S, hd)
            ctx_ref[r0:r0 + S, c0:c0 + hd] = ctx_h.astype(ctx_ref.dtype)

    attn = jnp.dot(ctx_ref[...], wo_ref[...],
                   preferred_element_type=jnp.float32) + bo_ref[...]
    x1 = x + attn                                           # residual (f32)

    # ---------------- MLP (QuickGELU) ----------------
    h2 = _layernorm(x1, ln2w_ref[...], ln2b_ref[...])
    h1 = jnp.dot(h2.astype(mm), w1_ref[...],
                 preferred_element_type=jnp.float32) + b1_ref[...]
    h1 = h1 * jax.nn.sigmoid(1.702 * h1)                    # QuickGELU (f32)
    y = jnp.dot(h1.astype(mm), w2_ref[...],
                preferred_element_type=jnp.float32) + b2_ref[...]
    o_ref[...] = (x1 + y).astype(o_ref.dtype)


def ln_proj_kernel(idx_ref, x_ref, lnw_ref, lnb_ref, wp_ref, o_ref):
    """ln_final + text_projection on one gathered EOT row (gather via BlockSpec)."""
    del idx_ref  # consumed by the index_maps only
    x = x_ref[...].astype(jnp.float32)                      # (1, D)
    h = _layernorm(x, lnw_ref[...], lnb_ref[...])
    o_ref[...] = jnp.dot(h.astype(wp_ref.dtype), wp_ref[...],
                         preferred_element_type=jnp.float32).astype(o_ref.dtype)


# ----------------------------------------------------------------------------
# Wrappers
# ----------------------------------------------------------------------------
def transformer_layer(x2, blk, *, num_heads, seq_len, seq_block):
    """x2: (B*S, D) f32 flat residual stream; returns same shape/dtype."""
    rows, D = x2.shape
    F = blk["w1"].shape[1]
    rt = seq_block * seq_len                                # rows per grid step
    assert rows % rt == 0 and rt % 8 == 0
    kernel = functools.partial(layer_kernel, num_heads=num_heads,
                               seq_len=seq_len)
    return pl.pallas_call(
        kernel,
        out_shape=jax.ShapeDtypeStruct((rows, D), x2.dtype),
        grid=(rows // rt,),
        in_specs=[
            pl.BlockSpec((rt, D), lambda i: (i, 0)),        # x (pipelined)
            _resident((1, D)), _resident((1, D)),           # ln1 w/b
            _resident((D, 3 * D)), _resident((1, 3 * D)),   # fused qkv
            _resident((D, D)), _resident((1, D)),           # out proj
            _resident((1, D)), _resident((1, D)),           # ln2 w/b
            _resident((D, F)), _resident((1, F)),           # w1/b1
            _resident((F, D)), _resident((1, D)),           # w2/b2
        ],
        out_specs=pl.BlockSpec((rt, D), lambda i: (i, 0)),
        scratch_shapes=[pltpu.VMEM((rt, D), blk["wqkv"].dtype)],   # ctx buffer
        compiler_params=pltpu.CompilerParams(
            dimension_semantics=("parallel",),
            vmem_limit_bytes=VMEM_LIMIT_BYTES),
    )(x2,
      blk["ln1_w"].reshape(1, D), blk["ln1_b"].reshape(1, D),
      blk["wqkv"], blk["bqkv"].reshape(1, 3 * D),
      blk["wo"], blk["bo"].reshape(1, D),
      blk["ln2_w"].reshape(1, D), blk["ln2_b"].reshape(1, D),
      blk["w1"], blk["b1"].reshape(1, F),
      blk["w2"], blk["b2"].reshape(1, D))


def ln_project(x2, flat_idx, ln_w, ln_b, wp):
    """Gathers the EOT rows (via scalar-prefetch block indices), applies
    ln_final + text_projection in one fused kernel."""
    rows, D = x2.shape
    B = flat_idx.shape[0]
    E = wp.shape[1]
    return pl.pallas_call(
        ln_proj_kernel,
        out_shape=jax.ShapeDtypeStruct((B, E), jnp.float32),
        grid_spec=pltpu.PrefetchScalarGridSpec(
            num_scalar_prefetch=1,
            grid=(B,),
            in_specs=[
                # row block of size 1 -> block index == flat row index (gather)
                pl.BlockSpec((1, D), lambda b, idx: (idx[b], 0)),
                _resident((1, D)), _resident((1, D)),       # ln_final w/b
                _resident((D, E)),                          # text_projection
            ],
            out_specs=pl.BlockSpec((1, E), lambda b, idx: (b, 0)),
        ),
        compiler_params=pltpu.CompilerParams(
            dimension_semantics=("arbitrary",)),
    )(flat_idx, x2, ln_w.reshape(1, D), ln_b.reshape(1, D), wp)


def _pick_seq_block(batch, seq, target_rows=256):
    """Largest divisor of batch with seq_block*seq <= target_rows, preferring a
    grid of >=2 steps (megacore / v7x dual-TC sharding)."""
    divisors = [d for d in range(1, batch + 1)
                if batch % d == 0 and d * seq <= target_rows]
    if not divisors:
        return 1
    multi_step = [d for d in divisors if batch // d >= 2]
    return max(multi_step) if multi_step else max(divisors)


# ----------------------------------------------------------------------------
# CLIP text encoder (encode_text)
# ----------------------------------------------------------------------------
def init_params(key, vocab, context, width, heads, layers, embed_dim,
                *, matmul_dtype=jnp.bfloat16):
    del heads  # layout does not depend on the head count

    def nrm(k, shape, std=0.02):
        return (std * jax.random.normal(k, shape)).astype(jnp.float32)

    keys = jax.random.split(key, 4 + layers)
    params = {
        "token_embedding": nrm(keys[0], (vocab, width)),
        "positional_embedding": nrm(keys[1], (context, width), std=0.01),
        "ln_final_w": jnp.ones((width,), jnp.float32),
        "ln_final_b": jnp.zeros((width,), jnp.float32),
        "text_projection": nrm(keys[2], (width, embed_dim),
                               std=width ** -0.5).astype(matmul_dtype),
        "blocks": [],
    }
    for l in range(layers):
        bkeys = jax.random.split(keys[4 + l], 8)
        params["blocks"].append({
            "ln1_w": jnp.ones((width,), jnp.float32),
            "ln1_b": jnp.zeros((width,), jnp.float32),
            "wqkv": nrm(bkeys[0], (width, 3 * width)).astype(matmul_dtype),
            "bqkv": jnp.zeros((3 * width,), jnp.float32),
            "wo": nrm(bkeys[1], (width, width)).astype(matmul_dtype),
            "bo": jnp.zeros((width,), jnp.float32),
            "ln2_w": jnp.ones((width,), jnp.float32),
            "ln2_b": jnp.zeros((width,), jnp.float32),
            "w1": nrm(bkeys[2], (width, 4 * width)).astype(matmul_dtype),
            "b1": jnp.zeros((4 * width,), jnp.float32),
            "w2": nrm(bkeys[3], (4 * width, width)).astype(matmul_dtype),
            "b2": jnp.zeros((width,), jnp.float32),
        })
    return params


def encode_text(params, text, *, num_heads, seq_block=None):
    """TextCLIP.forward(text) == model.encode_text(text)."""
    B, S = text.shape
    D = params["token_embedding"].shape[1]

    # Token-embedding gather + positional embedding (JAX glue).
    x = params["token_embedding"][text] + params["positional_embedding"][None, :S, :]
    x2 = x.reshape(B * S, D)                                 # flat residual stream

    if seq_block is None:
        seq_block = _pick_seq_block(B, S)

    # One fused pallas_call per transformer layer.
    for blk in params["blocks"]:
        x2 = transformer_layer(x2, blk, num_heads=num_heads,
                               seq_len=S, seq_block=seq_block)

    # EOT index = argmax over token ids (valid: EOT has the largest id in the
    # CLIP tokenizer).  The row gather itself is done inside ln_project.
    eot_idx = jnp.argmax(text, axis=-1).astype(jnp.int32)
    flat_idx = jnp.arange(B, dtype=jnp.int32) * S + eot_idx
    return ln_project(x2, flat_idx, params["ln_final_w"], params["ln_final_b"],
                      params["text_projection"])             # (B, embed_dim)


# ----------------------------------------------------------------------------
if __name__ == "__main__":
    # Small CLIP-text config, lane-friendly: D = 128, S multiple of 8.
    VOCAB, CONTEXT, WIDTH, HEADS, LAYERS, EMBED_DIM = 64, 16, 128, 2, 2, 128
    B = 4

    key = jax.random.PRNGKey(0)
    pkey, tkey = jax.random.split(key)
    params = init_params(pkey, VOCAB, CONTEXT, WIDTH, HEADS, LAYERS, EMBED_DIM)

    # Synthetic tokenized text: random tokens, EOT (= VOCAB-1, the max id) at a
    # fixed position per sequence so argmax(-1) finds it, zero padding after.
    tokens = jax.random.randint(tkey, (B, CONTEXT), 1, VOCAB - 2)
    eot_positions = jnp.array([5, 3, 10, 7], dtype=jnp.int32)
    pos = jnp.arange(CONTEXT)[None, :]
    tokens = jnp.where(pos == eot_positions[:, None], VOCAB - 1, tokens)
    tokens = jnp.where(pos > eot_positions[:, None], 0, tokens).astype(jnp.int32)

    out = encode_text(params, tokens, num_heads=HEADS)
    out = jax.block_until_ready(out)
    assert out.shape == (B, EMBED_DIM) and out.dtype == jnp.float32
    assert bool(jnp.all(jnp.isfinite(out)))
    print("KERNEL_OK")
</pallas_src>

<mosaic_0001>
module attributes {stable_mosaic.version = 11 : i64} {
  func.func @_k(%arg0: i32, %arg1: memref<8x128xf32, #tpu.memory_space<vmem>>, %arg2: memref<8x128xf32, #tpu.memory_space<vmem>>) attributes {dimension_semantics = [#tpu.dimension_semantics<arbitrary>], iteration_bounds = array<i64: 2>, scalar_prefetch = 0 : i64, scratch_operands = 0 : i64, tpu.core_type = #tpu.core_type<tc>, window_params = [{pipeline_mode = #tpu.pipeline_mode<synchronous>, transform_indices = @transform_0, window_bounds = array<i64: 8, 128>}, {pipeline_mode = #tpu.pipeline_mode<synchronous>, transform_indices = @transform_1, window_bounds = array<i64: 8, 128>}]} {
    %c0 = arith.constant 0 : index
    %c0_0 = arith.constant 0 : index
    %0 = vector.load %arg1[%c0, %c0_0] : memref<8x128xf32, #tpu.memory_space<vmem>>, vector<8x128xf32>
    %cst = arith.constant 1.000000e+00 : f32
    %1 = vector.broadcast %cst : f32 to vector<8x128xf32>
    %2 = arith.addf %0, %1 : vector<8x128xf32>
    %c0_1 = arith.constant 0 : index
    %c0_2 = arith.constant 0 : index
    %3 = vector.load %arg2[%c0_1, %c0_2] : memref<8x128xf32, #tpu.memory_space<vmem>>, vector<8x128xf32>
    tpu.vector_store %arg2[%c0_1, %c0_2], %2 {strides = array<i32>} : memref<8x128xf32, #tpu.memory_space<vmem>>, vector<8x128xf32>,
    return
  }
  func.func @transform_0(%arg0: i32) -> (i32, i32) {
    %c0_i32 = arith.constant 0 : i32
    %c0_i32_0 = arith.constant 0 : i32
    %c0_i32_1 = arith.constant 0 : i32
    return %c0_i32, %c0_i32_0 : i32, i32
  }
  func.func @transform_1(%arg0: i32) -> (i32, i32) {
    %c0_i32 = arith.constant 0 : i32
    %c0_i32_0 = arith.constant 0 : i32
    %c0_i32_1 = arith.constant 0 : i32
    return %c0_i32, %c0_i32_0 : i32, i32
  }
}

module attributes {stable_mosaic.version = 11 : i64} {
  func.func @layer_kernel(%arg0: i32, %arg1: memref<32x128xf32, #tpu.memory_space<vmem>>, %arg2: memref<1x128xf32, #tpu.memory_space<vmem>>, %arg3: memref<1x128xf32, #tpu.memory_space<vmem>>, %arg4: memref<128x384xbf16, #tpu.memory_space<vmem>>, %arg5: memref<1x384xf32, #tpu.memory_space<vmem>>, %arg6: memref<128x128xbf16, #tpu.memory_space<vmem>>, %arg7: memref<1x128xf32, #tpu.memory_space<vmem>>, %arg8: memref<1x128xf32, #tpu.memory_space<vmem>>, %arg9: memref<1x128xf32, #tpu.memory_space<vmem>>, %arg10: memref<128x512xbf16, #tpu.memory_space<vmem>>, %arg11: memref<1x512xf32, #tpu.memory_space<vmem>>, %arg12: memref<512x128xbf16, #tpu.memory_space<vmem>>, %arg13: memref<1x128xf32, #tpu.memory_space<vmem>>, %arg14: memref<32x128xf32, #tpu.memory_space<vmem>>, %arg15: memref<32x128xbf16, #tpu.memory_space<vmem>>) attributes {dimension_semantics = [#tpu.dimension_semantics<parallel>], iteration_bounds = array<i64: 2>, scalar_prefetch = 0 : i64, scratch_operands = 1 : i64, tpu.core_type = #tpu.core_type<tc>, window_params = [{transform_indices = @transform_0, window_bounds = array<i64: 32, 128>}, {pipeline_mode = #tpu.pipeline_mode<synchronous>, transform_indices = @transform_1, window_bounds = array<i64: 1, 128>}, {pipeline_mode = #tpu.pipeline_mode<synchronous>, transform_indices = @transform_2, window_bounds = array<i64: 1, 128>}, {pipeline_mode = #tpu.pipeline_mode<synchronous>, transform_indices = @transform_3, window_bounds = array<i64: 128, 384>}, {pipeline_mode = #tpu.pipeline_mode<synchronous>, transform_indices = @transform_4, window_bounds = array<i64: 1, 384>}, {pipeline_mode = #tpu.pipeline_mode<synchronous>, transform_indices = @transform_5, window_bounds = array<i64: 128, 128>}, {pipeline_mode = #tpu.pipeline_mode<synchronous>, transform_indices = @transform_6, window_bounds = array<i64: 1, 128>}, {pipeline_mode = #tpu.pipeline_mode<synchronous>, transform_indices = @transform_7, window_bounds = array<i64: 1, 128>}, {pipeline_mode = #tpu.pipeline_mode<synchronous>, transform_indices = @transform_8, window_bounds = array<i64: 1, 128>}, {pipeline_mode = #tpu.pipeline_mode<synchronous>, transform_indices = @transform_9, window_bounds = array<i64: 128, 512>}, {pipeline_mode = #tpu.pipeline_mode<synchronous>, transform_indices = @transform_10, window_bounds = array<i64: 1, 512>}, {pipeline_mode = #tpu.pipeline_mode<synchronous>, transform_indices = @transform_11, window_bounds = array<i64: 512, 128>}, {pipeline_mode = #tpu.pipeline_mode<synchronous>, transform_indices = @transform_12, window_bounds = array<i64: 1, 128>}, {transform_indices = @transform_13, window_bounds = array<i64: 32, 128>}]} {
    %c0 = arith.constant 0 : index
    %c0_0 = arith.constant 0 : index
    %0 = vector.load %arg1[%c0, %c0_0] : memref<32x128xf32, #tpu.memory_space<vmem>>, vector<32x128xf32>
    %c0_1 = arith.constant 0 : index
    %c0_2 = arith.constant 0 : index
    %1 = vector.load %arg2[%c0_1, %c0_2] : memref<1x128xf32, #tpu.memory_space<vmem>>, vector<1x128xf32>
    %c0_3 = arith.constant 0 : index
    %c0_4 = arith.constant 0 : index
    %2 = vector.load %arg3[%c0_3, %c0_4] : memref<1x128xf32, #tpu.memory_space<vmem>>, vector<1x128xf32>
    %cst = arith.constant dense<0.000000e+00> : vector<32xf32>
    %3 = vector.multi_reduction <add>, %0, %cst [1] : vector<32x128xf32> to vector<32xf32>
    %4 = vector.shape_cast %3 : vector<32xf32> to vector<32x1xf32>
    %cst_5 = arith.constant 1.280000e+02 : f32
    %5 = vector.broadcast %cst_5 : f32 to vector<32x1xf32>
    %6 = arith.divf %4, %5 : vector<32x1xf32>
    %7 = vector.broadcast %6 : vector<32x1xf32> to vector<32x128xf32>
    %8 = arith.subf %0, %7 : vector<32x128xf32>
    %9 = arith.mulf %8, %8 : vector<32x128xf32>
    %cst_6 = arith.constant dense<0.000000e+00> : vector<32xf32>
    %10 = vector.multi_reduction <add>, %9, %cst_6 [1] : vector<32x128xf32> to vector<32xf32>
    %11 = vector.shape_cast %10 : vector<32xf32> to vector<32x1xf32>
    %cst_7 = arith.constant 1.280000e+02 : f32
    %12 = vector.broadcast %cst_7 : f32 to vector<32x1xf32>
    %13 = arith.divf %11, %12 : vector<32x1xf32>
    %14 = vector.broadcast %6 : vector<32x1xf32> to vector<32x128xf32>
    %15 = arith.subf %0, %14 : vector<32x128xf32>
    %cst_8 = arith.constant 9.99999974E-6 : f32
    %16 = vector.broadcast %cst_8 : f32 to vector<32x1xf32>
    %17 = arith.addf %13, %16 : vector<32x1xf32>
    %18 = math.rsqrt %17 : vector<32x1xf32>
    %19 = vector.broadcast %18 : vector<32x1xf32> to vector<32x128xf32>
    %20 = arith.mulf %15, %19 : vector<32x128xf32>
    %21 = vector.broadcast %1 : vector<1x128xf32> to vector<32x128xf32>
    %22 = arith.mulf %20, %21 : vector<32x128xf32>
    %23 = vector.broadcast %2 : vector<1x128xf32> to vector<32x128xf32>
    %24 = arith.addf %22, %23 : vector<32x128xf32>
    %25 = arith.truncf %24 : vector<32x128xf32> to vector<32x128xbf16>
    %c0_9 = arith.constant 0 : index
    %c0_10 = arith.constant 0 : index
    %26 = vector.load %arg4[%c0_9, %c0_10] : memref<128x384xbf16, #tpu.memory_space<vmem>>, vector<128x384xbf16>
    %cst_11 = arith.constant dense<0.000000e+00> : vector<32x384xf32>
    %27 = tpu.matmul %25, %26, %cst_11 {dimension_numbers = #tpu.dot_dimension_numbers<[1], [0], [0], [1], [0, 0, 1, 1], [], []>} : vector<32x128xbf16>, vector<128x384xbf16>, vector<32x384xf32> -> vector<32x384xf32>
    %c0_12 = arith.constant 0 : index
    %c0_13 = arith.constant 0 : index
    %28 = vector.load %arg5[%c0_12, %c0_13] : memref<1x384xf32, #tpu.memory_space<vmem>>, vector<1x384xf32>
    %29 = vector.broadcast %28 : vector<1x384xf32> to vector<32x384xf32>
    %30 = arith.addf %27, %29 : vector<32x384xf32>
    %31 = arith.truncf %30 : vector<32x384xf32> to vector<32x384xbf16>
    %32 = tpu.iota {dimensions = array<i32: 0>} : vector<16x16xi32>
    %33 = tpu.iota {dimensions = array<i32: 1>} : vector<16x16xi32>
    %34 = arith.cmpi sle, %33, %32 : vector<16x16xi32>
    %35 = vector.extract_strided_slice %31 {offsets = [0, 0], sizes = [16, 64], strides = [1, 1]} : vector<32x384xbf16> to vector<16x64xbf16>
    %36 = vector.extract_strided_slice %31 {offsets = [0, 128], sizes = [16, 64], strides = [1, 1]} : vector<32x384xbf16> to vector<16x64xbf16>
    %37 = vector.extract_strided_slice %31 {offsets = [0, 256], sizes = [16, 64], strides = [1, 1]} : vector<32x384xbf16> to vector<16x64xbf16>
    %cst_14 = arith.constant dense<0.000000e+00> : vector<16x16xf32>
    %38 = tpu.matmul %35, %36, %cst_14 {dimension_numbers = #tpu.dot_dimension_numbers<[1], [1], [0], [0], [0, 0, 1, 0], [], []>} : vector<16x64xbf16>, vector<16x64xbf16>, vector<16x16xf32> -> vector<16x16xf32>
    %cst_15 = arith.constant 1.250000e-01 : f32
    %39 = vector.broadcast %cst_15 : f32 to vector<16x16xf32>
    %40 = arith.mulf %38, %39 : vector<16x16xf32>
    %cst_16 = arith.constant -1.000000e+09 : f32
    %41 = vector.broadcast %cst_16 : f32 to vector<16x16xf32>
    %42 = arith.select %34, %40, %41 : vector<16x16xi1>, vector<16x16xf32>
    %cst_17 = arith.constant dense<0xFF800000> : vector<16xf32>
    %43 = vector.multi_reduction <maximumf>, %42, %cst_17 [1] : vector<16x16xf32> to vector<16xf32>
    %44 = vector.shape_cast %43 : vector<16xf32> to vector<16x1xf32>
    %45 = vector.broadcast %44 : vector<16x1xf32> to vector<16x16xf32>
    %46 = arith.subf %42, %45 : vector<16x16xf32>
    %47 = math.exp %46 : vector<16x16xf32>
    %cst_18 = arith.constant dense<0.000000e+00> : vector<16xf32>
    %48 = vector.multi_reduction <add>, %47, %cst_18 [1] : vector<16x16xf32> to vector<16xf32>
    %49 = vector.shape_cast %48 : vector<16xf32> to vector<16x1xf32>
    %50 = tpu.reciprocal %49 {approx = true} : vector<16x1xf32> -> vector<16x1xf32>
    %51 = vector.broadcast %50 : vector<16x1xf32> to vector<16x16xf32>
    %52 = arith.mulf %47, %51 : vector<16x16xf32>
    %53 = arith.truncf %52 : vector<16x16xf32> to vector<16x16xbf16>
    %cst_19 = arith.constant dense<0.000000e+00> : vector<16x64xf32>
    %54 = tpu.matmul %53, %37, %cst_19 {dimension_numbers = #tpu.dot_dimension_numbers<[1], [0], [0], [1], [0, 0, 1, 1], [], []>} : vector<16x16xbf16>, vector<16x64xbf16>, vector<16x64xf32> -> vector<16x64xf32>
    %55 = arith.truncf %54 : vector<16x64xf32> to vector<16x64xbf16>
    %c0_20 = arith.constant 0 : index
    %c0_21 = arith.constant 0 : index
    %56 = vector.load %arg15[%c0_20, %c0_21] : memref<32x128xbf16, #tpu.memory_space<vmem>>, vector<16x64xbf16>
    tpu.vector_store %arg15[%c0_20, %c0_21], %55 {strides = array<i32>} : memref<32x128xbf16, #tpu.memory_space<vmem>>, vector<16x64xbf16>,
    %57 = vector.extract_strided_slice %31 {offsets = [0, 64], sizes = [16, 64], strides = [1, 1]} : vector<32x384xbf16> to vector<16x64xbf16>
    %58 = vector.extract_strided_slice %31 {offsets = [0, 192], sizes = [16, 64], strides = [1, 1]} : vector<32x384xbf16> to vector<16x64xbf16>
    %59 = vector.extract_strided_slice %31 {offsets = [0, 320], sizes = [16, 64], strides = [1, 1]} : vector<32x384xbf16> to vector<16x64xbf16>
    %cst_22 = arith.constant dense<0.000000e+00> : vector<16x16xf32>
    %60 = tpu.matmul %57, %58, %cst_22 {dimension_numbers = #tpu.dot_dimension_numbers<[1], [1], [0], [0], [0, 0, 1, 0], [], []>} : vector<16x64xbf16>, vector<16x64xbf16>, vector<16x16xf32> -> vector<16x16xf32>
    %cst_23 = arith.constant 1.250000e-01 : f32
    %61 = vector.broadcast %cst_23 : f32 to vector<16x16xf32>
    %62 = arith.mulf %60, %61 : vector<16x16xf32>
    %cst_24 = arith.constant -1.000000e+09 : f32
    %63 = vector.broadcast %cst_24 : f32 to vector<16x16xf32>
    %64 = arith.select %34, %62, %63 : vector<16x16xi1>, vector<16x16xf32>
    %cst_25 = arith.constant dense<0xFF800000> : vector<16xf32>
    %65 = vector.multi_reduction <maximumf>, %64, %cst_25 [1] : vector<16x16xf32> to vector<16xf32>
    %66 = vector.shape_cast %65 : vector<16xf32> to vector<16x1xf32>
    %67 = vector.broadcast %66 : vector<16x1xf32> to vector<16x16xf32>
    %68 = arith.subf %64, %67 : vector<16x16xf32>
    %69 = math.exp %68 : vector<16x16xf32>
    %cst_26 = arith.constant dense<0.000000e+00> : vector<16xf32>
    %70 = vector.multi_reduction <add>, %69, %cst_26 [1] : vector<16x16xf32> to vector<16xf32>
    %71 = vector.shape_cast %70 : vector<16xf32> to vector<16x1xf32>
    %72 = tpu.reciprocal %71 {approx = true} : vector<16x1xf32> -> vector<16x1xf32>
    %73 = vector.broadcast %72 : vector<16x1xf32> to vector<16x16xf32>
    %74 = arith.mulf %69, %73 : vector<16x16xf32>
    %75 = arith.truncf %74 : vector<16x16xf32> to vector<16x16xbf16>
    %cst_27 = arith.constant dense<0.000000e+00> : vector<16x64xf32>
    %76 = tpu.matmul %75, %59, %cst_27 {dimension_numbers = #tpu.dot_dimension_numbers<[1], [0], [0], [1], [0, 0, 1, 1], [], []>} : vector<16x16xbf16>, vector<16x64xbf16>, vector<16x64xf32> -> vector<16x64xf32>
    %77 = arith.truncf %76 : vector<16x64xf32> to vector<16x64xbf16>
    %c0_28 = arith.constant 0 : index
    %c64 = arith.constant 64 : index
    %78 = vector.load %arg15[%c0_28, %c64] : memref<32x128xbf16, #tpu.memory_space<vmem>>, vector<16x64xbf16>
    tpu.vector_store %arg15[%c0_28, %c64], %77 {strides = array<i32>} : memref<32x128xbf16, #tpu.memory_space<vmem>>, vector<16x64xbf16>,
    %79 = vector.extract_strided_slice %31 {offsets = [16, 0], sizes = [16, 64], strides = [1, 1]} : vector<32x384xbf16> to vector<16x64xbf16>
    %80 = vector.extract_strided_slice %31 {offsets = [16, 128], sizes = [16, 64], strides = [1, 1]} : vector<32x384xbf16> to vector<16x64xbf16>
    %81 = vector.extract_strided_slice %31 {offsets = [16, 256], sizes = [16, 64], strides = [1, 1]} : vector<32x384xbf16> to vector<16x64xbf16>
    %cst_29 = arith.constant dense<0.000000e+00> : vector<16x16xf32>
    %82 = tpu.matmul %79, %80, %cst_29 {dimension_numbers = #tpu.dot_dimension_numbers<[1], [1], [0], [0], [0, 0, 1, 0], [], []>} : vector<16x64xbf16>, vector<16x64xbf16>, vector<16x16xf32> -> vector<16x16xf32>
    %cst_30 = arith.constant 1.250000e-01 : f32
    %83 = vector.broadcast %cst_30 : f32 to vector<16x16xf32>
    %84 = arith.mulf %82, %83 : vector<16x16xf32>
    %cst_31 = arith.constant -1.000000e+09 : f32
    %85 = vector.broadcast %cst_31 : f32 to vector<16x16xf32>
    %86 = arith.select %34, %84, %85 : vector<16x16xi1>, vector<16x16xf32>
    %cst_32 = arith.constant dense<0xFF800000> : vector<16xf32>
    %87 = vector.multi_reduction <maximumf>, %86, %cst_32 [1] : vector<16x16xf32> to vector<16xf32>
    %88 = vector.shape_cast %87 : vector<16xf32> to vector<16x1xf32>
    %89 = vector.broadcast %88 : vector<16x1xf32> to vector<16x16xf32>
    %90 = arith.subf %86, %89 : vector<16x16xf32>
    %91 = math.exp %90 : vector<16x16xf32>
    %cst_33 = arith.constant dense<0.000000e+00> : vector<16xf32>
    %92 = vector.multi_reduction <add>, %91, %cst_33 [1] : vector<16x16xf32> to vector<16xf32>
    %93 = vector.shape_cast %92 : vector<16xf32> to vector<16x1xf32>
    %94 = tpu.reciprocal %93 {approx = true} : vector<16x1xf32> -> vector<16x1xf32>
    %95 = vector.broadcast %94 : vector<16x1xf32> to vector<16x16xf32>
    %96 = arith.mulf %91, %95 : vector<16x16xf32>
    %97 = arith.truncf %96 : vector<16x16xf32> to vector<16x16xbf16>
    %cst_34 = arith.constant dense<0.000000e+00> : vector<16x64xf32>
    %98 = tpu.matmul %97, %81, %cst_34 {dimension_numbers = #tpu.dot_dimension_numbers<[1], [0], [0], [1], [0, 0, 1, 1], [], []>} : vector<16x16xbf16>, vector<16x64xbf16>, vector<16x64xf32> -> vector<16x64xf32>
    %99 = arith.truncf %98 : vector<16x64xf32> to vector<16x64xbf16>
    %c16 = arith.constant 16 : index
    %c0_35 = arith.constant 0 : index
    %100 = vector.load %arg15[%c16, %c0_35] : memref<32x128xbf16, #tpu.memory_space<vmem>>, vector<16x64xbf16>
    tpu.vector_store %arg15[%c16, %c0_35], %99 {strides = array<i32>} : memref<32x128xbf16, #tpu.memory_space<vmem>>, vector<16x64xbf16>,
    %101 = vector.extract_strided_slice %31 {offsets = [16, 64], sizes = [16, 64], strides = [1, 1]} : vector<32x384xbf16> to vector<16x64xbf16>
    %102 = vector.extract_strided_slice %31 {offsets = [16, 192], sizes = [16, 64], strides = [1, 1]} : vector<32x384xbf16> to vector<16x64xbf16>
    %103 = vector.extract_strided_slice %31 {offsets = [16, 320], sizes = [16, 64], strides = [1, 1]} : vector<32x384xbf16> to vector<16x64xbf16>
    %cst_36 = arith.constant dense<0.000000e+00> : vector<16x16xf32>
    %104 = tpu.matmul %101, %102, %cst_36 {dimension_numbers = #tpu.dot_dimension_numbers<[1], [1], [0], [0], [0, 0, 1, 0], [], []>} : vector<16x64xbf16>, vector<16x64xbf16>, vector<16x16xf32> -> vector<16x16xf32>
    %cst_37 = arith.constant 1.250000e-01 : f32
    %105 = vector.broadcast %cst_37 : f32 to vector<16x16xf32>
    %106 = arith.mulf %104, %105 : vector<16x16xf32>
    %cst_38 = arith.constant -1.000000e+09 : f32
    %107 = vector.broadcast %cst_38 : f32 to vector<16x16xf32>
    %108 = arith.select %34, %106, %107 : vector<16x16xi1>, vector<16x16xf32>
    %cst_39 = arith.constant dense<0xFF800000> : vector<16xf32>
    %109 = vector.multi_reduction <maximumf>, %108, %cst_39 [1] : vector<16x16xf32> to vector<16xf32>
    %110 = vector.shape_cast %109 : vector<16xf32> to vector<16x1xf32>
    %111 = vector.broadcast %110 : vector<16x1xf32> to vector<16x16xf32>
    %112 = arith.subf %108, %111 : vector<16x16xf32>
    %113 = math.exp %112 : vector<16x16xf32>
    %cst_40 = arith.constant dense<0.000000e+00> : vector<16xf32>
    %114 = vector.multi_reduction <add>, %113, %cst_40 [1] : vector<16x16xf32> to vector<16xf32>
    %115 = vector.shape_cast %114 : vector<16xf32> to vector<16x1xf32>
    %116 = tpu.reciprocal %115 {approx = true} : vector<16x1xf32> -> vector<16x1xf32>
    %117 = vector.broadcast %116 : vector<16x1xf32> to vector<16x16xf32>
    %118 = arith.mulf %113, %117 : vector<16x16xf32>
    %119 = arith.truncf %118 : vector<16x16xf32> to vector<16x16xbf16>
    %cst_41 = arith.constant dense<0.000000e+00> : vector<16x64xf32>
    %120 = tpu.matmul %119, %103, %cst_41 {dimension_numbers = #tpu.dot_dimension_numbers<[1], [0], [0], [1], [0, 0, 1, 1], [], []>} : vector<16x16xbf16>, vector<16x64xbf16>, vector<16x64xf32> -> vector<16x64xf32>
    %121 = arith.truncf %120 : vector<16x64xf32> to vector<16x64xbf16>
    %c16_42 = arith.constant 16 : index
    %c64_43 = arith.constant 64 : index
    %122 = vector.load %arg15[%c16_42, %c64_43] : memref<32x128xbf16, #tpu.memory_space<vmem>>, vector<16x64xbf16>
    tpu.vector_store %arg15[%c16_42, %c64_43], %121 {strides = array<i32>} : memref<32x128xbf16, #tpu.memory_space<vmem>>, vector<16x64xbf16>,
    %c0_44 = arith.constant 0 : index
    %c0_45 = arith.constant 0 : index
    %123 = vector.load %arg15[%c0_44, %c0_45] : memref<32x128xbf16, #tpu.memory_space<vmem>>, vector<32x128xbf16>
    %c0_46 = arith.constant 0 : index
    %c0_47 = arith.constant 0 : index
    %124 = vector.load %arg6[%c0_46, %c0_47] : memref<128x128xbf16, #tpu.memory_space<vmem>>, vector<128x128xbf16>
    %cst_48 = arith.constant dense<0.000000e+00> : vector<32x128xf32>
    %125 = tpu.matmul %123, %124, %cst_48 {dimension_numbers = #tpu.dot_dimension_numbers<[1], [0], [0], [1], [0, 0, 1, 1], [], []>} : vector<32x128xbf16>, vector<128x128xbf16>, vector<32x128xf32> -> vector<32x128xf32>
    %c0_49 = arith.constant 0 : index
    %c0_50 = arith.constant 0 : index
    %126 = vector.load %arg7[%c0_49, %c0_50] : memref<1x128xf32, #tpu.memory_space<vmem>>, vector<1x128xf32>
    %127 = vector.broadcast %126 : vector<1x128xf32> to vector<32x128xf32>
    %128 = arith.addf %125, %127 : vector<32x128xf32>
    %129 = arith.addf %0, %128 : vector<32x128xf32>
    %c0_51 = arith.constant 0 : index
    %c0_52 = arith.constant 0 : index
    %130 = vector.load %arg8[%c0_51, %c0_52] : memref<1x128xf32, #tpu.memory_space<vmem>>, vector<1x128xf32>
    %c0_53 = arith.constant 0 : index
    %c0_54 = arith.constant 0 : index
    %131 = vector.load %arg9[%c0_53, %c0_54] : memref<1x128xf32, #tpu.memory_space<vmem>>, vector<1x128xf32>
    %cst_55 = arith.constant dense<0.000000e+00> : vector<32xf32>
    %132 = vector.multi_reduction <add>, %129, %cst_55 [1] : vector<32x128xf32> to vector<32xf32>
    %133 = vector.shape_cast %132 : vector<32xf32> to vector<32x1xf32>
    %cst_56 = arith.constant 1.280000e+02 : f32
    %134 = vector.broadcast %cst_56 : f32 to vector<32x1xf32>
    %135 = arith.divf %133, %134 : vector<32x1xf32>
    %136 = vector.broadcast %135 : vector<32x1xf32> to vector<32x128xf32>
    %137 = arith.subf %129, %136 : vector<32x128xf32>
    %138 = arith.mulf %137, %137 : vector<32x128xf32>
    %cst_57 = arith.constant dense<0.000000e+00> : vector<32xf32>
    %139 = vector.multi_reduction <add>, %138, %cst_57 [1] : vector<32x128xf32> to vector<32xf32>
    %140 = vector.shape_cast %139 : vector<32xf32> to vector<32x1xf32>
    %cst_58 = arith.constant 1.280000e+02 : f32
    %141 = vector.broadcast %cst_58 : f32 to vector<32x1xf32>
    %142 = arith.divf %140, %141 : vector<32x1xf32>
    %143 = vector.broadcast %135 : vector<32x1xf32> to vector<32x128xf32>
    %144 = arith.subf %129, %143 : vector<32x128xf32>
    %cst_59 = arith.constant 9.99999974E-6 : f32
    %145 = vector.broadcast %cst_59 : f32 to vector<32x1xf32>
    %146 = arith.addf %142, %145 : vector<32x1xf32>
    %147 = math.rsqrt %146 : vector<32x1xf32>
    %148 = vector.broadcast %147 : vector<32x1xf32> to vector<32x128xf32>
    %149 = arith.mulf %144, %148 : vector<32x128xf32>
    %150 = vector.broadcast %130 : vector<1x128xf32> to vector<32x128xf32>
    %151 = arith.mulf %149, %150 : vector<32x128xf32>
    %152 = vector.broadcast %131 : vector<1x128xf32> to vector<32x128xf32>
    %153 = arith.addf %151, %152 : vector<32x128xf32>
    %154 = arith.truncf %153 : vector<32x128xf32> to vector<32x128xbf16>
    %c0_60 = arith.constant 0 : index
    %c0_61 = arith.constant 0 : index
    %155 = vector.load %arg10[%c0_60, %c0_61] : memref<128x512xbf16, #tpu.memory_space<vmem>>, vector<128x512xbf16>
    %cst_62 = arith.constant dense<0.000000e+00> : vector<32x512xf32>
    %156 = tpu.matmul %154, %155, %cst_62 {dimension_numbers = #tpu.dot_dimension_numbers<[1], [0], [0], [1], [0, 0, 1, 1], [], []>} : vector<32x128xbf16>, vector<128x512xbf16>, vector<32x512xf32> -> vector<32x512xf32>
    %c0_63 = arith.constant 0 : index
    %c0_64 = arith.constant 0 : index
    %157 = vector.load %arg11[%c0_63, %c0_64] : memref<1x512xf32, #tpu.memory_space<vmem>>, vector<1x512xf32>
    %158 = vector.broadcast %157 : vector<1x512xf32> to vector<32x512xf32>
    %159 = arith.addf %156, %158 : vector<32x512xf32>
    %cst_65 = arith.constant 1.702000e+00 : f32
    %160 = vector.broadcast %cst_65 : f32 to vector<32x512xf32>
    %161 = arith.mulf %160, %159 : vector<32x512xf32>
    %162 = arith.negf %161 : vector<32x512xf32>
    %163 = math.exp %162 : vector<32x512xf32>
    %cst_66 = arith.constant 1.000000e+00 : f32
    %164 = vector.broadcast %cst_66 : f32 to vector<32x512xf32>
    %165 = arith.addf %164, %163 : vector<32x512xf32>
    %166 = arith.divf %164, %165 : vector<32x512xf32>
    %167 = arith.mulf %159, %166 : vector<32x512xf32>
    %168 = arith.truncf %167 : vector<32x512xf32> to vector<32x512xbf16>
    %c0_67 = arith.constant 0 : index
    %c0_68 = arith.constant 0 : index
    %169 = vector.load %arg12[%c0_67, %c0_68] : memref<512x128xbf16, #tpu.memory_space<vmem>>, vector<512x128xbf16>
    %cst_69 = arith.constant dense<0.000000e+00> : vector<32x128xf32>
    %170 = tpu.matmul %168, %169, %cst_69 {dimension_numbers = #tpu.dot_dimension_numbers<[1], [0], [0], [1], [0, 0, 1, 1], [], []>} : vector<32x512xbf16>, vector<512x128xbf16>, vector<32x128xf32> -> vector<32x128xf32>
    %c0_70 = arith.constant 0 : index
    %c0_71 = arith.constant 0 : index
    %171 = vector.load %arg13[%c0_70, %c0_71] : memref<1x128xf32, #tpu.memory_space<vmem>>, vector<1x128xf32>
    %172 = vector.broadcast %171 : vector<1x128xf32> to vector<32x128xf32>
    %173 = arith.addf %170, %172 : vector<32x128xf32>
    %174 = arith.addf %129, %173 : vector<32x128xf32>
    %c0_72 = arith.constant 0 : index
    %c0_73 = arith.constant 0 : index
    %175 = vector.load %arg14[%c0_72, %c0_73] : memref<32x128xf32, #tpu.memory_space<vmem>>, vector<32x128xf32>
    tpu.vector_store %arg14[%c0_72, %c0_73], %174 {strides = array<i32>} : memref<32x128xf32, #tpu.memory_space<vmem>>, vector<32x128xf32>,
    return
  }
  func.func @transform_0(%arg0: i32) -> (i32, i32) {
    %c0_i32 = arith.constant 0 : i32
    %c0_i32_0 = arith.constant 0 : i32
    return %arg0, %c0_i32 : i32, i32
  }
  func.func @transform_1(%arg0: i32) -> (i32, i32) {
    %c0_i32 = arith.constant 0 : i32
    %c0_i32_0 = arith.constant 0 : i32
    %c0_i32_1 = arith.constant 0 : i32
    return %c0_i32, %c0_i32_0 : i32, i32
  }
  func.func @transform_2(%arg0: i32) -> (i32, i32) {
    %c0_i32 = arith.constant 0 : i32
    %c0_i32_0 = arith.constant 0 : i32
    %c0_i32_1 = arith.constant 0 : i32
    return %c0_i32, %c0_i32_0 : i32, i32
  }
  func.func @transform_3(%arg0: i32) -> (i32, i32) {
    %c0_i32 = arith.constant 0 : i32
    %c0_i32_0 = arith.constant 0 : i32
    %c0_i32_1 = arith.constant 0 : i32
    return %c0_i32, %c0_i32_0 : i32, i32
  }
  func.func @transform_4(%arg0: i32) -> (i32, i32) {
    %c0_i32 = arith.constant 0 : i32
    %c0_i32_0 = arith.constant 0 : i32
    %c0_i32_1 = arith.constant 0 : i32
    return %c0_i32, %c0_i32_0 : i32, i32
  }
  func.func @transform_5(%arg0: i32) -> (i32, i32) {
    %c0_i32 = arith.constant 0 : i32
    %c0_i32_0 = arith.constant 0 : i32
    %c0_i32_1 = arith.constant 0 : i32
    return %c0_i32, %c0_i32_0 : i32, i32
  }
  func.func @transform_6(%arg0: i32) -> (i32, i32) {
    %c0_i32 = arith.constant 0 : i32
    %c0_i32_0 = arith.constant 0 : i32
    %c0_i32_1 = arith.constant 0 : i32
    return %c0_i32, %c0_i32_0 : i32, i32
  }
  func.func @transform_7(%arg0: i32) -> (i32, i32) {
    %c0_i32 = arith.constant 0 : i32
    %c0_i32_0 = arith.constant 0 : i32
    %c0_i32_1 = arith.constant 0 : i32
    return %c0_i32, %c0_i32_0 : i32, i32
  }
  func.func @transform_8(%arg0: i32) -> (i32, i32) {
    %c0_i32 = arith.constant 0 : i32
    %c0_i32_0 = arith.constant 0 : i32
    %c0_i32_1 = arith.constant 0 : i32
    return %c0_i32, %c0_i32_0 : i32, i32
  }
  func.func @transform_9(%arg0: i32) -> (i32, i32) {
    %c0_i32 = arith.constant 0 : i32
    %c0_i32_0 = arith.constant 0 : i32
    %c0_i32_1 = arith.constant 0 : i32
    return %c0_i32, %c0_i32_0 : i32, i32
  }
  func.func @transform_10(%arg0: i32) -> (i32, i32) {
    %c0_i32 = arith.constant 0 : i32
    %c0_i32_0 = arith.constant 0 : i32
    %c0_i32_1 = arith.constant 0 : i32
    return %c0_i32, %c0_i32_0 : i32, i32
  }
  func.func @transform_11(%arg0: i32) -> (i32, i32) {
    %c0_i32 = arith.constant 0 : i32
    %c0_i32_0 = arith.constant 0 : i32
    %c0_i32_1 = arith.constant 0 : i32
    return %c0_i32, %c0_i32_0 : i32, i32
  }
  func.func @transform_12(%arg0: i32) -> (i32, i32) {
    %c0_i32 = arith.constant 0 : i32
    %c0_i32_0 = arith.constant 0 : i32
    %c0_i32_1 = arith.constant 0 : i32
    return %c0_i32, %c0_i32_0 : i32, i32
  }
  func.func @transform_13(%arg0: i32) -> (i32, i32) {
    %c0_i32 = arith.constant 0 : i32
    %c0_i32_0 = arith.constant 0 : i32
    return %arg0, %c0_i32 : i32, i32
  }
}

</mosaic_0001>

<bundles_post_ra>
// kernel: tpu_custom_call.1
= control target key start
LH: loop header
LB: loop body
LE: loop exit
PB: predicated region body
PF: predicated region fallthrough
CT: control target
= control target key end

     0   :  { %6 = vsyncpa [#allocation3], 0  ;;  %s341_s0 = inlined_call_operand.hbm [shape: f32[8,128], index: 0, kind: input, shape index: {}]   ;;  %s342_s1 = inlined_call_operand.hbm [shape: f32[8,128], index: 1, kind: output, shape index: {}]  }
   0x1   :  { %7 = vsyncpa [#allocation4], 0  ;;  %s262_s6 = smov 0  }
   0x2 LB: > { %s145_s7 = sadd.s32 4294967295, %s248_s6   ;;  %p146_p0 = scmp.ge.s32.totalorder %s248_s6, 1  ;;  %s248_s6 = sphi %s262_s6, %s13_s6  }
   0x3   : > { %p60_p1 = scmp.lt.s32.totalorder %s248_s6, 3  ;;  %p276_p3 = scmp.eq.s32.totalorder %s145_s7, 0 }
   0x4   : > { %s250_s10 = smov [#allocation2]   ;;  %s180_s15 = scalar_lea.hbm %s341_s0, 128 }
   0x5   : > { %p270_p2 = pnand %p146_p0, %p60_p1  ;;  %s73_s11 = sshll.u32 %s250_s10, 4  ;;  %s74_s11 = int_to_ptr.vmem [resolvable:$true] %s73_s11 }
   0x6   : > { %s347_s9 = scalar_select %p276_p3, 1, 0 }
   0x7   : > { %s346_s8 = scalar_select %p270_p2, 1, 0 }
   0x8   : > { %p162_p4 = pneg %p270_p2  ;;  %p181_p6 = scmp.ne.s32.totalorder %s341_s0, %s180_s15 }
   0x9   : > { %p187_p10 = scmp.lt.u32.totalorder %s180_s15, %s341_s0 }
   0xa   : > { %p284_p5 = pnand %p276_p3, %p162_p4 }
   0xc   : > { %p182_p7 = pneg %p284_p5 }
   0xe   : > { %p183_p8 = pnand %p182_p7, %p181_p6 }
  0x10   : > { %p184_p9 = pneg %p183_p8 }
  0x12   : > { %p189_p11 = pnand %p187_p10, %p184_p9 }
  0x14   : > { %192 = shalt.err (!%p189_p11)
}
  0x15   : > { %s193_s20 = scalar_lea.vmem %s74_s11, 128  ;;  %p201_p1 = scmp.lt.s32.totalorder %s74_s11, %s74_s11 }
  0x16   : > { %p194_p12 = scmp.ne.s32.totalorder %s74_s11, %s193_s20  ;;  %p202_p4 = scmp.lt.s32.totalorder %s193_s20, %s193_s20 }
  0x18   : > { %p196_p13 = pnand %p194_p12, %p182_p7  ;;  %p203_p3 = por %p202_p4, %p201_p1 }
  0x1a   : > { %p197_p0 = pneg %p196_p13 }
  0x1c   : > { %p204_p2 = pnand %p203_p3, %p197_p0 }
  0x1e   : > { %207 = shalt.err (!%p204_p2)
}
  0x1f   : > { %165 = dma.hbm_to_vmem [thread:$0]  (!%p284_p5), %s341_s0, 128, %s74_s11, [#allocation3]  }
  0x20   : > { %p349_p6 = scmp.ne.s32.totalorder %s346_s8, 0 }
  0x21   : > { %p350_p8 = scmp.ne.s32.totalorder (!%p349_p6), %s347_s9, 0 }
  0x22   : > { %86 = sbr.rel (%p349_p6) target bundleno = 67 (0x43), region = 24 }
  0x29   : > { %239 = dma.done.wait (%p350_p8), [#allocation3], 128  }
  0x2a   : > { %241 = vsyncadd (%p350_p8), [#allocation3], 4294967168  ;;  %s251_s23 = smov [#allocation5]   ;;  %v96_v0 = vld [vmem:[#allocation2] sm:$0xff]  ;;  %p312_p2 = scmp.eq.s32.totalorder %s145_s7, 1 }
  0x2b   : > { %s106_s24 = sshll.u32 %s251_s23, 4  ;;  %v97_v1 = vadd.f32 1.0, %v96_v0  ;;  %s107_s24 = int_to_ptr.vmem [resolvable:$true] %s106_s24 }
  0x2c   : > { %s208_s26 = scalar_lea.vmem %s107_s24, 128  ;;  %p215_p9 = scmp.lt.s32.totalorder %s107_s24, %s107_s24 }
  0x2d   : > { %98 = vst [vmem:[#allocation5] sm:$0xff] %v97_v1  ;;  %p209_p3 = scmp.ne.s32.totalorder %s107_s24, %s208_s26  ;;  %p216_p10 = scmp.lt.s32.totalorder %s208_s26, %s208_s26 }
  0x2f   : > { %p210_p5 = pnand %p209_p3, %p312_p2  ;;  %p217_p11 = por %p216_p10, %p215_p9 }
  0x31   : > { %p211_p7 = pneg %p210_p5 }
  0x33   : > { %p218_p12 = pnand %p217_p11, %p211_p7 }
  0x35   : > { %221 = shalt.err (!%p218_p12)
}
  0x36   : > { %s222_s29 = scalar_lea.hbm %s342_s1, 128 }
  0x37   : > { %p223_p13 = scmp.ne.s32.totalorder %s342_s1, %s222_s29  ;;  %p228_p4 = scmp.lt.u32.totalorder %s222_s29, %s342_s1 }
  0x39   : > { %p224_p0 = pnand %p223_p13, %p312_p2 }
  0x3b   : > { %p225_p1 = pneg %p224_p0 }
  0x3d   : > { %p230_p6 = pnand %p228_p4, %p225_p1 }
  0x3f   : > { %233 = shalt.err (!%p230_p6)
}
  0x40   : > { %159 = dma.vmem_to_hbm [thread:$0]  (%p312_p2), %s107_s24, 128, %s342_s1, [#allocation4]  }
  0x41   : > { %243 = dma.done.wait (%p312_p2), [#allocation4], 128  }
  0x42   : > { %245 = vsyncadd (%p312_p2), [#allocation4], 4294967168 }
  0x43 PF: > { %s13_s6 = sadd.s32 1, %s248_s6  }
  0x44   : > { %p10_p8 = scmp.ge.s32.totalorder %s13_s6, 4  }
  0x46   :  { %12 = sbr.rel (!%p10_p8) target bundleno = 2 (0x2), region = 53 }
  0x4d   :  { %119 = vsyncpa [#allocation3], 1 }
  0x4e   :  { %121 = vsyncpa [#allocation3 + $0x1], 1 }
  0x4f   :  { %122 = vsyncpa [#allocation4], 1 }
  0x50   :  { %124 = vsyncpa [#allocation4 + $0x1], 1 }

// kernel: tpu_custom_call.1
= control target key start
LH: loop header
LB: loop body
LE: loop exit
PB: predicated region body
PF: predicated region fallthrough
CT: control target
= control target key end

     0   :  { %s4255_s0 = inlined_call_operand.hbm [shape: f32[64,128], index: 0, kind: input, shape index: {}]   ;;  %s4256_s1 = inlined_call_operand.hbm [shape: f32[1,128], index: 1, kind: input, shape index: {}]   ;;  %s4257_s2 = inlined_call_operand.hbm [shape: f32[1,128], index: 2, kind: input, shape index: {}]   ;;  %s4258_s3 = inlined_call_operand.hbm [shape: bf16[128,384], index: 3, kind: input, shape index: {}]   ;;  %s4259_s4 = inlined_call_operand.vmem [shape: f32[1,384], index: 4, kind: input, shape index: {}]   ;;  %s4260_s5 = inlined_call_operand.hbm [shape: bf16[128,128], index: 5, kind: input, shape index: {}]   ;;  %s4261_s6 = inlined_call_operand.vmem [shape: f32[1,128], index: 6, kind: input, shape index: {}]   ;;  %s4262_s7 = inlined_call_operand.vmem [shape: f32[1,128], index: 7, kind: input, shape index: {}]   ;;  %s4263_s8 = inlined_call_operand.vmem [shape: f32[1,128], index: 8, kind: input, shape index: {}]   ;;  %s4264_s9 = inlined_call_operand.hbm [shape: bf16[128,512], index: 9, kind: input, shape index: {}]   ;;  %s4265_s10 = inlined_call_operand.vmem [shape: f32[1,512], index: 10, kind: input, shape index: {}]   ;;  %s4266_s11 = inlined_call_operand.hbm [shape: bf16[512,128], index: 11, kind: input, shape index: {}]   ;;  %s4267_s12 = inlined_call_operand.vmem [shape: f32[1,128], index: 12, kind: input, shape index: {}]   ;;  %s4268_s13 = inlined_call_operand.hbm [shape: f32[64,128], index: 13, kind: output, shape index: {}]  }
   0x1   :  { %4273 = sst [smem:[#allocation21_spill]] %s4256_s1 }
   0x2   :  { %4274 = sst [smem:[#allocation22_spill]] %s4258_s3 }
   0x3   :  { %4275 = sst [smem:[#allocation23_spill]] %s4262_s7 }
   0x4   :  { %4276 = sst [smem:[#allocation24_spill]] %s4263_s8 }
   0x5   :  { %4277 = sst [smem:[#allocation25_spill]] %s4265_s10 }
   0x6   :  { %4278 = sst [smem:[#allocation26_spill]] %s4267_s12 }
   0x7   :  { %4279 = sst [smem:[#allocation27_spill]] %s4268_s13 }
   0x8   :  { %18 = vsyncpa [#allocation4], 0 }
   0x9   :  { %20 = vsyncpa [#allocation4 + $0x1], 0 }
   0xa   :  { %21 = vsyncpa [#allocation7], 0 }
   0xb   :  { %22 = vsyncpa [#allocation10], 0 }
   0xc   :  { %23 = vsyncpa [#allocation13], 0 }
   0xd   :  { %24 = vsyncpa [#allocation5], 0 }
   0xe   :  { %26 = vsyncpa [#allocation5 + $0x1], 0  ;;  %s3645_s25 = smov 0   ;;  %s3647_s26 = smov 0  }
   0xf   :  { %s3649_s27 = smov 0   ;;  %s3651_s28 = smov 0  }
  0x10 LB: > { %s3553_s29 = smov [#allocation6]   ;;  %s3666_s14 = sadd.s32 4294967295, %s3551_s28   ;;  %s3551_s28 = sphi %s3651_s28, %s4309_s28   ;;  %s3547_s27 = sphi %s3649_s27, %s4308_s27   ;;  %s3543_s26 = sphi %s3647_s26, %s4307_s26   ;;  %s3539_s25 = sphi %s3645_s25, %s4306_s25  }
  0x11   : > { %s354_s30 = sshll.u32 %s3553_s29, 4  ;;  %p2585_p0 = scmp.ge.s32.totalorder %s3551_s28, 1  ;;  %s3671_s30 = int_to_ptr.vmem [resolvable:$true] %s354_s30 }
  0x12   : > { %p4270_p1 = scmp.eq.s32.totalorder %s3666_s14, 0  ;;  %p341_p2 = scmp.lt.s32.totalorder %s3551_s28, 3 }
  0x13   : > { %s3554_s16 = smov [#allocation9]   ;;  %s3555_s19 = smov [#allocation12]  }
  0x14   : > { %p3673_p3 = pnand %p2585_p0, %p341_p2  ;;  %s375_s17 = sshll.u32 %s3554_s16, 4  ;;  %s3680_s17 = int_to_ptr.vmem [resolvable:$true] %s375_s17 }
  0x15   : > { %s413_s20 = sshll.u32 %s3555_s19, 4  ;;  %s4282_s1 = sld [smem:[#allocation21_spill]]  ;;  %s3688_s20 = int_to_ptr.vmem [resolvable:$true] %s413_s20 }
  0x16   : > { %s4280_s15 = scalar_select %p3673_p3, 1, 0 }
  0x17   : > { %p2946_p5 = pneg %p3673_p3 }
  0x19   : > { %p3684_p6 = pnand %p2946_p5, %p4270_p1 }
  0x1b   : > { %s3275_s23 = scalar_lea.hbm %s4282_s1, 16  ;;  %p3698_p8 = pneg %p3684_p6 }
  0x1c   : > { %p3276_p7 = scmp.ne.s32.totalorder %s4282_s1, %s3275_s23  ;;  %p3282_p11 = scmp.lt.u32.totalorder %s3275_s23, %s4282_s1 }
  0x1e   : > { %p3278_p9 = pnand %p3698_p8, %p3276_p7 }
  0x20   : > { %p3279_p10 = pneg %p3278_p9 }
  0x22   : > { %p3284_p12 = pnand %p3282_p11, %p3279_p10 }
  0x24   : > { %3287 = shalt.err (!%p3284_p12)
}
  0x25   : > { %s3288_s21 = scalar_lea.vmem %s3671_s30, 16  ;;  %s3295_s22 = scalar_lea.vmem %s3671_s30, 32 }
  0x26   : > { %p3289_p13 = scmp.ne.s32.totalorder %s3671_s30, %s3288_s21  ;;  %p3296_p5 = scmp.lt.s32.totalorder %s3671_s30, %s3671_s30 }
  0x27   : > { %p3297_p7 = scmp.lt.s32.totalorder %s3295_s22, %s3288_s21 }
  0x28   : > { %p3291_p0 = pnand %p3289_p13, %p3698_p8 }
  0x29   : > { %p3298_p9 = por %p3297_p7, %p3296_p5 }
  0x2a   : > { %p3292_p2 = pneg %p3291_p0 }
  0x2c   : > { %p3299_p4 = pnand %p3298_p9, %p3292_p2 }
  0x2e   : > { %3302 = shalt.err (!%p3299_p4)
}
  0x2f   : > { %2949 = dma.hbm_to_vmem [thread:$0]  (!%p3684_p6), %s4282_s1, 16, %s3671_s30, [#allocation7]  }
  0x30   : > { %s4284_s3 = sld [smem:[#allocation22_spill]] }
  0x36   : > { %s3303_s19 = scalar_lea.hbm %s4284_s3, 3072 }
  0x37   : > { %p3304_p10 = scmp.ne.s32.totalorder %s4284_s3, %s3303_s19  ;;  %p3310_p4 = scmp.lt.u32.totalorder %s3303_s19, %s4284_s3 }
  0x39   : > { %p3306_p11 = pnand %p3304_p10, %p3698_p8 }
  0x3b   : > { %p3307_p12 = pneg %p3306_p11 }
  0x3d   : > { %p3312_p13 = pnand %p3310_p4, %p3307_p12 }
  0x3f   : > { %3315 = shalt.err (!%p3312_p13)
}
  0x40   : > { %s3316_s30 = scalar_lea.vmem %s3680_s17, 3072  ;;  %p3324_p7 = scmp.lt.s32.totalorder %s3680_s17, %s3680_s17 }
  0x41   : > { %p3317_p0 = scmp.ne.s32.totalorder %s3680_s17, %s3316_s30  ;;  %p3325_p9 = scmp.lt.s32.totalorder %s3316_s30, %s3316_s30 }
  0x43   : > { %p3319_p2 = pnand %p3317_p0, %p3698_p8  ;;  %p3326_p10 = por %p3325_p9, %p3324_p7 }
  0x45   : > { %p3320_p5 = pneg %p3319_p2 }
  0x47   : > { %p3327_p11 = pnand %p3326_p10, %p3320_p5 }
  0x49   : > { %3330 = shalt.err (!%p3327_p11)
}
  0x4a   : > { %s3556_s10 = smov 192   ;;  %s3557_s12 = smov 12  }
  0x4b   : > { %2955 = dma.hbm_to_vmem [thread:$0]  (!%p3684_p6), %s4284_s3, 3072, %s3680_s17, [#allocation10], %s3556_s10, %s3556_s10, %s3557_s12  }
  0x4c   : > { %s3331_s19 = scalar_lea.hbm %s4264_s9, 4096 }
  0x4d   : > { %p3332_p12 = scmp.ne.s32.totalorder %s4264_s9, %s3331_s19  ;;  %p3338_p0 = scmp.lt.u32.totalorder %s3331_s19, %s4264_s9 }
  0x4f   : > { %p3334_p4 = pnand %p3332_p12, %p3698_p8 }
  0x51   : > { %p3335_p13 = pneg %p3334_p4 }
  0x53   : > { %p3340_p2 = pnand %p3338_p0, %p3335_p13 }
  0x55   : > { %3343 = shalt.err (!%p3340_p2)
}
  0x56   : > { %s3344_s17 = scalar_lea.vmem %s3688_s20, 4096  ;;  %p3352_p10 = scmp.lt.s32.totalorder %s3688_s20, %s3688_s20 }
  0x57   : > { %p3345_p5 = scmp.ne.s32.totalorder %s3688_s20, %s3344_s17  ;;  %p3353_p11 = scmp.lt.s32.totalorder %s3344_s17, %s3344_s17 }
  0x59   : > { %p3347_p7 = pnand %p3345_p5, %p3698_p8  ;;  %p3354_p12 = por %p3353_p11, %p3352_p10 }
  0x5b   : > { %p3348_p9 = pneg %p3347_p7 }
  0x5d   : > { %p3355_p4 = pnand %p3354_p12, %p3348_p9 }
  0x5f   : > { %3358 = shalt.err (!%p3355_p4)
}
  0x60   : > { %s3558_s10 = smov 256   ;;  %s3559_s1 = smov 16  }
  0x61   : > { %2961 = dma.hbm_to_vmem [thread:$0]  (!%p3684_p6), %s4264_s9, 4096, %s3688_s20, [#allocation13], %s3558_s10, %s3558_s10, %s3559_s1  }
  0x62   : > { %s3560_s23 = smov [#allocation8]   ;;  %s3561_s29 = smov [#allocation11]  }
  0x63   : > { %s365_s24 = sshll.u32 %s3560_s23, 4  ;;  %s391_s19 = sshll.u32 %s3561_s29, 4  ;;  %s366_s24 = int_to_ptr.vmem [resolvable:$true] %s365_s24  ;;  %s392_s19 = int_to_ptr.vmem [resolvable:$true] %s391_s19 }
  0x64   : > { %s3359_s30 = scalar_lea.hbm %s4257_s2, 16 }
  0x65   : > { %p3360_p13 = scmp.ne.s32.totalorder %s4257_s2, %s3359_s30  ;;  %p3366_p5 = scmp.lt.u32.totalorder %s3359_s30, %s4257_s2 }
  0x67   : > { %p3362_p0 = pnand %p3360_p13, %p3698_p8 }
  0x69   : > { %p3363_p2 = pneg %p3362_p0 }
  0x6b   : > { %p3368_p7 = pnand %p3366_p5, %p3363_p2 }
  0x6d   : > { %3371 = shalt.err (!%p3368_p7)
}
  0x6e   : > { %s3372_s20 = scalar_lea.vmem %s366_s24, 16  ;;  %s3379_s10 = scalar_lea.vmem %s366_s24, 32 }
  0x6f   : > { %p3373_p9 = scmp.ne.s32.totalorder %s366_s24, %s3372_s20  ;;  %p3380_p12 = scmp.lt.s32.totalorder %s366_s24, %s366_s24 }
  0x70   : > { %p3381_p4 = scmp.lt.s32.totalorder %s3379_s10, %s3372_s20 }
  0x71   : > { %p3375_p10 = pnand %p3373_p9, %p3698_p8 }
  0x72   : > { %p3382_p1 = por %p3381_p4, %p3380_p12 }
  0x73   : > { %p3376_p11 = pneg %p3375_p10 }
  0x75   : > { %p3383_p3 = pnand %p3382_p1, %p3376_p11 }
  0x77   : > { %3386 = shalt.err (!%p3383_p3)
}
  0x78   : > { %2952 = dma.hbm_to_vmem [thread:$0]  (!%p3684_p6), %s4257_s2, 16, %s366_s24, [#allocation7]  }
  0x79   : > { %s3387_s12 = scalar_lea.hbm %s4260_s5, 1024 }
  0x7a   : > { %p3388_p13 = scmp.ne.s32.totalorder %s4260_s5, %s3387_s12  ;;  %p3394_p3 = scmp.lt.u32.totalorder %s3387_s12, %s4260_s5 }
  0x7c   : > { %p3390_p0 = pnand %p3388_p13, %p3698_p8 }
  0x7e   : > { %p3391_p1 = pneg %p3390_p0 }
  0x80   : > { %p3396_p2 = pnand %p3394_p3, %p3391_p1 }
  0x82   : > { %3399 = shalt.err (!%p3396_p2)
}
  0x83   : > { %s3400_s22 = scalar_lea.vmem %s392_s19, 1024  ;;  %p3408_p10 = scmp.lt.s32.totalorder %s392_s19, %s392_s19 }
  0x84   : > { %p3401_p5 = scmp.ne.s32.totalorder %s392_s19, %s3400_s22  ;;  %p3409_p11 = scmp.lt.s32.totalorder %s3400_s22, %s3400_s22 }
  0x86   : > { %p3403_p7 = pnand %p3401_p5, %p3698_p8  ;;  %p3410_p12 = por %p3409_p11, %p3408_p10 }
  0x88   : > { %p3404_p9 = pneg %p3403_p7 }
  0x8a   : > { %p3411_p4 = pnand %p3410_p12, %p3404_p9 }
  0x8c   : > { %3414 = shalt.err (!%p3411_p4)
}
  0x8d   : > { %s3562_s24 = smov 64   ;;  %s3563_s30 = smov 4  }
  0x8e   : > { %2958 = dma.hbm_to_vmem [thread:$0]  (!%p3684_p6), %s4260_s5, 1024, %s392_s19, [#allocation10], %s3562_s24, %s3562_s24, %s3563_s30  }
  0x8f   : > { %s3564_s10 = smov [#allocation14]   ;;  %s3415_s8 = scalar_lea.hbm %s4266_s11, 4096 }
  0x90   : > { %s429_s3 = sshll.u32 %s3564_s10, 4  ;;  %p3416_p13 = scmp.ne.s32.totalorder %s4266_s11, %s3415_s8  ;;  %s430_s3 = int_to_ptr.vmem [resolvable:$true] %s429_s3 }
  0x91   : > { %p3422_p3 = scmp.lt.u32.totalorder %s3415_s8, %s4266_s11 }
  0x92   : > { %p3418_p0 = pnand %p3416_p13, %p3698_p8 }
  0x94   : > { %p3419_p1 = pneg %p3418_p0 }
  0x96   : > { %p3424_p2 = pnand %p3422_p3, %p3419_p1 }
  0x98   : > { %3427 = shalt.err (!%p3424_p2)
}
  0x99   : > { %s3428_s19 = scalar_lea.vmem %s430_s3, 4096  ;;  %p3436_p10 = scmp.lt.s32.totalorder %s430_s3, %s430_s3 }
  0x9a   : > { %p3429_p5 = scmp.ne.s32.totalorder %s430_s3, %s3428_s19  ;;  %p3437_p11 = scmp.lt.s32.totalorder %s3428_s19, %s3428_s19 }
  0x9c   : > { %p3431_p7 = pnand %p3429_p5, %p3698_p8  ;;  %p3438_p12 = por %p3437_p11, %p3436_p10 }
  0x9e   : > { %p3432_p9 = pneg %p3431_p7 }
  0xa0   : > { %p3439_p4 = pnand %p3438_p12, %p3432_p9 }
  0xa2   : > { %3442 = shalt.err (!%p3439_p4)
}
  0xa3   : > { %2964 = dma.hbm_to_vmem [thread:$0]  (!%p3684_p6), %s4266_s11, 4096, %s430_s3, [#allocation13], %s3562_s24, %s3562_s24, %s3563_s30  }
  0xa4   : > { %s2584_s16 = sadd.s32 4294967294, %s3551_s28   ;;  %s3822_s18 = sadd.s32 1, %s3551_s28  }
  0xa5   : > { %s36_s17 = ssub.s32 %s3551_s28, %s3822_s18  ;;  %s39_s20 = sadd.s32 1, %s3547_s27 }
  0xa6   : > { %p37_p8 = scmp.eq.s32.totalorder %s36_s17, 0  ;;  %p46_p13 = scmp.ne.s32.totalorder %s3547_s27, %s3543_s26 }
  0xa7   : > { %p47_p0 = scmp.eq.s32.totalorder %s3551_s28, 0  ;;  %p52_p1 = scmp.ne.s32.totalorder %s3543_s26, %s3539_s25 }
  0xa8   : > { %s3833_s10 = scalar_select %p37_p8, %s3547_s27, %s39_s20  }
  0xa9   : > { %p3835_p3 = por %p47_p0, %p46_p13  ;;  %p4286_p2 = scmp.eq.s32.totalorder %s3666_s14, 0 }
  0xaa   : > { %p328_p5 = scmp.eq.s32.totalorder %s3666_s14, 1  ;;  %p334_p7 = scmp.eq.s32.totalorder %s2584_s16, 1 }
  0xab   : > { %p3841_p6 = por %p4286_p2, %p52_p1  ;;  %p2979_p9 = scmp.lt.s32.totalorder %s3551_s28, 2 }
  0xac   : > { %s446_s30 = sand.u32 1, %s3547_s27   ;;  %p3848_p10 = por %p328_p5, %p46_p13 }
  0xad   : > { %p3852_p11 = por %p334_p7, %p52_p1  ;;  %s2593_s8 = sshll.u32 %s446_s30, 5 }
  0xae   : > { %s4288_s3 = scalar_select %p3848_p10, 1, 0 }
  0xaf   : > { %s4289_s7 = scalar_select %p3852_p11, 1, 0 }
  0xb0   : > { %s2736_s12 = sshll.u32 %s3551_s28, 9  ;;  %s450_s19 = scalar_lea.vmem [#allocation3], %s2593_s8 }
  0xb1   : > { %s3860_s29 = scalar_lea.hbm %s4255_s0, %s2736_s12  ;;  %s457_s21 = sshll.u32 %s450_s19, 4  ;;  %s3862_s21 = int_to_ptr.vmem [resolvable:$true] %s457_s21 }
  0xb2   : > { %p3866_p12 = pnand %p2979_p9, %p3835_p3  ;;  %s3870_s16 = scalar_lea.sflag [#allocation4], %s446_s30 }
  0xb3   : > { %s3443_s17 = scalar_lea.hbm %s3860_s29, 512  ;;  %s3448_s1 = scalar_lea.hbm %s4255_s0, 1024 }
  0xb4   : > { %p3444_p4 = scmp.ne.s32.totalorder %s3860_s29, %s3443_s17  ;;  %p3445_p8 = pneg %p3866_p12 }
  0xb5   : > { %p3449_p1 = scmp.lt.u32.totalorder %s3860_s29, %s4255_s0  ;;  %p3450_p3 = scmp.lt.u32.totalorder %s3448_s1, %s3443_s17 }
  0xb6   : > { %p3446_p13 = pnand %p3445_p8, %p3444_p4  ;;  %p3452_p5 = scmp.lt.u32.totalorder %s3443_s17, %s3860_s29 }
  0xb7   : > { %p3451_p2 = por %p3450_p3, %p3449_p1 }
  0xb8   : > { %p3447_p0 = pneg %p3446_p13 }
  0xb9   : > { %p3453_p7 = por %p3452_p5, %p3451_p2 }
  0xbb   : > { %p3454_p9 = pnand %p3453_p7, %p3447_p0 }
  0xbd   : > { %3457 = shalt.err (!%p3454_p9)
}
  0xbe   : > { %s3458_s30 = scalar_lea.vmem %s3862_s21, 512  ;;  %s3565_s23 = smov [#allocation3]  }
  0xbf   : > { %p3459_p4 = scmp.ne.s32.totalorder %s3862_s21, %s3458_s30  ;;  %s3463_s19 = sshll.u32 %s3565_s23, 4  ;;  %s3464_s19 = int_to_ptr.vmem [resolvable:$false] %s3463_s19 }
  0xc0   : > { %s3465_s20 = scalar_lea.vmem %s3464_s19, 1024  ;;  %p3466_p10 = scmp.lt.s32.totalorder %s3862_s21, %s3464_s19 }
  0xc1   : > { %p3461_p13 = pnand %p3459_p4, %p3445_p8  ;;  %p3467_p1 = scmp.lt.s32.totalorder %s3465_s20, %s3458_s30 }
  0xc3   : > { %p3462_p11 = pneg %p3461_p13  ;;  %p3468_p3 = por %p3467_p1, %p3466_p10 }
  0xc5   : > { %p3469_p2 = pnand %p3468_p3, %p3462_p11 }
  0xc7   : > { %3472 = shalt.err (!%p3469_p2)
}
  0xc8   : > { %s3566_s17 = smov 128   ;;  %s3567_s8 = smov 8  }
  0xc9   : > { %2968 = dma.hbm_to_vmem [thread:$0]  (!%p3866_p12), %s3860_s29, 512, %s3862_s21, %s3870_s16, %s3566_s17, %s3566_s17, %s3567_s8  }
  0xca   : > { %p4291_p8 = scmp.ne.s32.totalorder %s4280_s15, 0 }
  0xcb   : > { %s3901_s1 = sand.u32 (!%p4291_p8), 1, %s3543_s26  }
  0xcc   : > { %469 = sbr.rel (%p4291_p8) target bundleno = 2819 (0xb03), region = 72  ;;  %s2597_s12 = sshll.u32 (!%p4291_p8), %s3901_s1, 5 }
  0xcd   : > { %s472_s13 = scalar_lea.sflag (!%p4291_p8), [#allocation4], %s3901_s1  ;;  %s3907_s30 = scalar_lea.vmem (!%p4291_p8), [#allocation3], %s2597_s12 }
  0xd3   : > { %3518 = dma.done.wait (%p3841_p6), %s472_s13, 512  }
  0xd4   : > { %3520 = vsyncadd (%p3841_p6), %s472_s13, 4294966784  ;;  %p4292_p10 = scmp.eq.s32.totalorder %s3666_s14, 0 }
  0xd6   : > { %3522 = dma.done.wait (%p4292_p10), [#allocation7], 32   ;;  %p4293_p11 = pmov %p4292_p10 }
  0xd7   : > { %p4294_p12 = pmov %p4292_p10 }
  0xd8   : > { %3524 = vsyncadd (%p4293_p11), [#allocation7], 4294967264 }
  0xd9   : > { %3526 = dma.done.wait (%p4294_p12), [#allocation10], 4096   ;;  %p4295_p0 = pmov %p4292_p10 }
  0xdb   : > { %3528 = vsyncadd (%p4295_p0), [#allocation10], 4294963200  ;;  %p4296_p5 = pmov %p4295_p0 }
  0xdc   : > { %p4297_p7 = pmov %p4295_p0 }
  0xdd   : > { %3530 = dma.done.wait (%p4296_p5), [#allocation13], 8192  }
  0xde   : > { %3532 = vsyncadd (%p4297_p7), [#allocation13], 4294959104  ;;  %v545_v0 = vld [vmem:[%s3907_s30] sm:$0xff]  ;;  %v547_v1 = vld [vmem:[%s3907_s30 + $0x10] sm:$0xff]  ;;  %v3568_v39 = vmov 0   ;;  %vm3570_vm0 = vmmov 0  }
  0xdf   : > { %v546_v2 = vld [vmem:[%s3907_s30 + $0x8] sm:$0xff]  ;;  %551 = vadd.xlane.f32.xlu0 %v545_v0  ;;  %555 = vadd.xlane.f32.xlu1 %v547_v1  ;;  %v548_v3 = vld [vmem:[%s3907_s30 + $0x18] sm:$0xff]  ;;  %v3041_v5 = vld [vmem:[#allocation9] ss:$12 sps:$4 sm:$0xff]   ;;  %vm910_vm1 = vcmask 523264   ;;  %s3571_s29 = smov 64  }
  0xe0   : > { %v3039_v4 = vld [vmem:[#allocation9 + $0x4] ss:$12 sps:$4 sm:$0xff]   ;;  %v3042_v6 = vld [vmem:[#allocation9 + $0x1c] ss:$12 sps:$4 sm:$0xff]   ;;  %v3046_v25 = vld [vmem:[#allocation9 + $0x34] ss:$12 sps:$4 sm:$0xff]   ;;  %827 = vmatprep.mubr.bf16.mxu0 %v3568_v39 }
  0xe1   : > { %v3044_v7 = vld [vmem:[#allocation9 + $0x8] ss:$12 sps:$4 sm:$0xff]   ;;  %795 = vmatprep.subr.bf16.mxu0 %v3039_v4  ;;  %v3045_v24 = vld [vmem:[#allocation9 + $0x18] ss:$12 sps:$4 sm:$0xff]   ;;  %v3048_v26 = vld [vmem:[#allocation9 + $0x20] ss:$12 sps:$4 sm:$0xff]  }
  0xe2   : > { %796 = vmatpush1.bf16.msra.mxu0 %v3041_v5  ;;  %2830 = vmatprep.subr.bf16.mxu1 %v3044_v7  ;;  %v3049_v27 = vld [vmem:[#allocation9 + $0x30] ss:$12 sps:$4 sm:$0xff]   ;;  %v3050_v28 = vld [vmem:[#allocation9 + $0x4c] ss:$12 sps:$4 sm:$0xff]   ;;  %v3053_v30 = vld [vmem:[#allocation9 + $0x48] ss:$12 sps:$4 sm:$0xff]  }
  0xe3   : > { %553 = vadd.xlane.f32.xlu0 %v546_v2  ;;  %557 = vadd.xlane.f32.xlu1 %v548_v3  ;;  %v3052_v29 = vld [vmem:[#allocation9 + $0x38] ss:$12 sps:$4 sm:$0xff]   ;;  %v3056_v32 = vld [vmem:[#allocation9 + $0x50] ss:$12 sps:$4 sm:$0xff]   ;;  %v3057_v33 = vld [vmem:[#allocation9 + $0x60] ss:$12 sps:$4 sm:$0xff]  }
  0xe4   : > { %797 = vmatprep.subr.bf16.mxu0 %v3042_v6  ;;  %2831 = vmatpush3.bf16.msra.mxu1 %v3044_v7  ;;  %v3054_v31 = vld [vmem:[#allocation9 + $0x64] ss:$12 sps:$4 sm:$0xff]   ;;  %v3058_v34 = vld [vmem:[#allocation9 + $0x7c] ss:$12 sps:$4 sm:$0xff]   ;;  %v3062_v37 = vld [vmem:[#allocation9 + $0x94] ss:$12 sps:$4 sm:$0xff]  }
  0xe5   : > { %2832 = vmatprep.subr.bf16.mxu1 %v3048_v26  ;;  %v3060_v35 = vld [vmem:[#allocation9 + $0x68] ss:$12 sps:$4 sm:$0xff]   ;;  %v3061_v36 = vld [vmem:[#allocation9 + $0x78] ss:$12 sps:$4 sm:$0xff]   ;;  %v3064_v38 = vld [vmem:[#allocation9 + $0x80] ss:$12 sps:$4 sm:$0xff]  }
  0xe6   : > { %798 = vmatpush1.bf16.msra.mxu0 %v3045_v24  ;;  %v3065_v40 = vld [vmem:[#allocation9 + $0x90] ss:$12 sps:$4 sm:$0xff]   ;;  %v3066_v41 = vld [vmem:[#allocation9 + $0xac] ss:$12 sps:$4 sm:$0xff]   ;;  %v3069_v43 = vld [vmem:[#allocation9 + $0xa8] ss:$12 sps:$4 sm:$0xff]  }
  0xe7   : > { %799 = vmatprep.subr.bf16.mxu0 %v3046_v25  ;;  %v3068_v42 = vld [vmem:[#allocation9 + $0x98] ss:$12 sps:$4 sm:$0xff]   ;;  %v3070_v44 = vld [vmem:[#allocation9 + $0xb0] ss:$12 sps:$4 sm:$0xff]   ;;  %vm962_vm3 = vcmask 130048   ;;  %vm1165_vm5 = vcmask 1048064  }
  0xe8   : > { %2833 = vmatpush3.bf16.msra.mxu1 %v3048_v26  ;;  %v2605_v59 = vld [vmem:[#allocation6] ss:$0 sm:$0xff]  ;;  %s4298_s19 = sld [smem:[#allocation23_spill]]  ;;  %s4299_s8 = sld [smem:[#allocation24_spill]] }
  0xe9   : > { %2834 = vmatprep.subr.bf16.mxu1 %v3052_v29  ;;  %s4300_s15 = sld [smem:[#allocation25_spill]]  ;;  %s4301_s21 = sld [smem:[#allocation26_spill]] }
  0xea   : > { %800 = vmatpush1.bf16.msra.mxu0 %v3049_v27  ;;  %s541_s22 = scalar_lea.vmem [#allocation15], %s2597_s12  ;;  %s2737_s16 = sshll.u32 %s3666_s14, 9 }
  0xeb   : > { %801 = vmatprep.subr.bf16.mxu0 %v3050_v28  ;;  %s2454_s12 = sshll.u32 %s541_s22, 4  ;;  %s4302_s20 = sld [smem:[#allocation27_spill]]  ;;  %s4204_s12 = int_to_ptr.vmem [resolvable:$true] %s2454_s12 }
  0xec   : > { %2835 = vmatpush3.bf16.msra.mxu1 %v3052_v29  ;;  %s3473_s13 = scalar_lea.vmem %s4204_s12, 512  ;;  %p4303_p9 = scmp.ne.s32.totalorder %s4288_s3, 0 }
  0xed   : > { %2836 = vmatprep.subr.bf16.mxu1 %v3056_v32  ;;  %p3474_p6 = scmp.ne.s32.totalorder %s4204_s12, %s3473_s13  ;;  %s3572_s14 = smov [#allocation15]  }
  0xee   : > { %802 = vmatpush1.bf16.msra.mxu0 %v3053_v30 }
  0xef   : > { %803 = vmatprep.subr.bf16.mxu0 %v3054_v31  ;;  %p3475_p4 = pnand %p3474_p6, %p4303_p9 }
  0xf0   : > { %2837 = vmatpush3.bf16.msra.mxu1 %v3056_v32 }
  0xf1   : > { %2838 = vmatprep.subr.bf16.mxu1 %v3060_v35  ;;  %s4210_s17 = scalar_lea.hbm %s4302_s20, %s2737_s16  ;;  %p3476_p13 = pneg %p3475_p4 }
  0xf2   : > { %804 = vmatpush1.bf16.msra.mxu0 %v3057_v33 }
  0xf3   : > { %805 = vmatprep.subr.bf16.mxu0 %v3058_v34 }
  0xf4   : > { %2839 = vmatpush3.bf16.msra.mxu1 %v3060_v35 }
  0xf5   : > { %2840 = vmatprep.subr.bf16.mxu1 %v3064_v38 }
  0xf6   : > { %806 = vmatpush1.bf16.msra.mxu0 %v3061_v36 }
  0xf7   : > { %807 = vmatprep.subr.bf16.mxu0 %v3062_v37 }
  0xf8   : > { %2841 = vmatpush3.bf16.msra.mxu1 %v3064_v38 }
  0xf9   : > { %2842 = vmatprep.subr.bf16.mxu1 %v3068_v42 }
  0xfa   : > { %808 = vmatpush1.bf16.msra.mxu0 %v3065_v40 }
  0xfb   : > { %809 = vmatprep.subr.bf16.mxu0 %v3066_v41 }
  0xfc   : > { %2843 = vmatpush3.bf16.msra.mxu1 %v3068_v42 }
  0xfd   : > { %2844 = vmatprep.subr.bf16.mxu1 %v3070_v44 }
  0xfe   : > { %810 = vmatpush1.bf16.msra.mxu0 %v3069_v43 }
 0x100   : > { %2845 = vmatpush3.bf16.msra.mxu1 %v3070_v44 }
 0x16c   : > { %v552_v8 = vpop.xlane.xlu0 %551  ;;  %v556_v9 = vpop.xlane.xlu1 %555 }
 0x16d   : > { %v560_v10 = vmul.f32 0.0078125, %v552_v8  ;;  %v562_v11 = vmul.f32 0.0078125, %v556_v9 }
 0x16f   : > { %v3929_v12 = vsub.f32 %v545_v0, %v560_v10  ;;  %v3931_v13 = vsub.f32 %v547_v1, %v562_v11  ;;  %v2606_v0 = vld [vmem:[#allocation8] ss:$0 sm:$0xff] }
 0x170   : > { %v554_v14 = vpop.xlane.xlu0 %553  ;;  %v558_v15 = vpop.xlane.xlu1 %557 }
 0x171   : > { %v561_v16 = vmul.f32 0.0078125, %v554_v14  ;;  %v568_v17 = vmul.f32 %v3929_v12, %v3929_v12  ;;  %v563_v18 = vmul.f32 0.0078125, %v558_v15  ;;  %v570_v21 = vmul.f32 %v3931_v13, %v3931_v13 }
 0x172   : > { %v3569_v14 = vmov 0.0  }
 0x173   : > { %v3935_v19 = vsub.f32 %v546_v2, %v561_v16  ;;  %572 = vadd.xlane.f32.xlu0 %v568_v17  ;;  %v3937_v20 = vsub.f32 %v548_v3, %v563_v18  ;;  %2850 = vmatprep.subr.bf16.mxu0 %v3569_v14  ;;  %v650_v17 = vld [vmem:[%s4259_s4] sm:$0x7] }
 0x174   : > { %2862 = vmatprep.subr.bf16.mxu1 %v3569_v14 }
 0x175   : > { %v569_v22 = vmul.f32 %v3935_v19, %v3935_v19  ;;  %v571_v23 = vmul.f32 %v3937_v20, %v3937_v20 }
 0x177   : > { %576 = vadd.xlane.f32.xlu0 %v570_v21  ;;  %574 = vadd.xlane.f32.xlu1 %v569_v22 }
 0x17b   : > { %578 = vadd.xlane.f32.xlu1 %v571_v23 }
 0x200   : > { %v573_v45 = vpop.xlane.xlu0 %572 }
 0x201   : > { %v580_v46 = vmul.f32 0.0078125, %v573_v45 }
 0x203   : > { %v584_v47 = vadd.f32 1e-05, %v580_v46 }
 0x204   : > { %v575_v48 = vpop.xlane.xlu1 %574  ;;  %v577_v49 = vpop.xlane.xlu0 %576 }
 0x205   : > { %3159 = vrsqrt.f32 %v584_v47  ;;  %v581_v50 = vmul.f32 0.0078125, %v575_v48  ;;  %v582_v51 = vmul.f32 0.0078125, %v577_v49 }
 0x207   : > { %v585_v52 = vadd.f32 1e-05, %v581_v50  ;;  %v586_v53 = vadd.f32 1e-05, %v582_v51 }
 0x208   : > { %v579_v54 = vpop.xlane.xlu1 %578 }
 0x209   : > { %3161 = vrsqrt.f32 %v585_v52  ;;  %v583_v55 = vmul.f32 0.0078125, %v579_v54 }
 0x20a   : > { %3163 = vrsqrt.f32 %v586_v53 }
 0x20b   : > { %v587_v56 = vadd.f32 1e-05, %v583_v55 }
 0x20d   : > { %3165 = vrsqrt.f32 %v587_v56 }
 0x20f   : > { %v3160_v57 = vpop.eup %3159 }
 0x210   : > { %v592_v58 = vmul.f32 %v3160_v57, %v3929_v12 }
 0x212   : > { %v602_v63 = vmul.f32 %v2605_v59, %v592_v58 }
 0x213   : > { %v3162_v60 = vpop.eup %3161 }
 0x214   : > { %v3164_v61 = vpop.eup %3163  ;;  %v593_v62 = vmul.f32 %v3162_v60, %v3935_v19  ;;  %v612_v4 = vadd.f32 %v2606_v0, %v602_v63 }
 0x215   : > { %v594_v1 = vmul.f32 %v3164_v61, %v3931_v13  ;;  %v652_v13 = vlaneseq }
 0x216   : > { %v603_v2 = vmul.f32 %v2605_v59, %v593_v62 }
 0x217   : > { %v3166_v3 = vpop.eup %3165  ;;  %v604_v7 = vmul.f32 %v2605_v59, %v594_v1  ;;  %v3958_v15 = vshrl.u32 %v652_v13, 7  ;;  %v907_v62 = vand.u32 127, %v652_v13 }
 0x218   : > { %v613_v5 = vadd.f32 %v2606_v0, %v603_v2  ;;  %v595_v6 = vmul.f32 %v3166_v3, %v3937_v20 }
 0x219   : > { %v614_v10 = vadd.f32 %v2606_v0, %v604_v7  ;;  %v654_v16 = vsub.s32 0, %v3958_v15  ;;  %v658_v18 = vsub.s32 1, %v3958_v15  ;;  %v662_v19 = vsub.s32 2, %v3958_v15 }
 0x21a   : > { %v616_v8 = vpack.c.bf16 %v613_v5, %v612_v4  ;;  %v605_v9 = vmul.f32 %v2605_v59, %v595_v6  ;;  %v905_v63 = vadd.s32 8, %v3958_v15  ;;  %vm908_vm2 = vcmp.le.s32.totalorder %v907_v62, %v3958_v15 }
 0x21b   : > { %v655_v20 = vrot.slane %v650_v17, %v654_v16  ;;  %v659_v22 = vrot.slane %v650_v17, %v658_v18  ;;  %v663_v24 = vrot.slane %v650_v17, %v662_v19 }
 0x21c   : > { %828 = vmatmul.mubr.bf16.vlgmr.msra.gmra.mrb[0].mxu0 %v616_v8  ;;  %2846 = vmatprep.mubr.bf16.mxu1 %v616_v8  ;;  %v615_v11 = vadd.f32 %v2606_v0, %v605_v9  ;;  %vm909_vm4 = vcmp.le.s32.totalorder %v907_v62, %v905_v63 }
 0x21d   : > { %837 = vmatprep.mubr.bf16.mxu0 %v3568_v39 }
 0x21e   : > { %v617_v12 = vpack.c.bf16 %v615_v11, %v614_v10 }
 0x220   : > { %2847 = vmatmul.mubr.bf16.vlgmr.msra.gmra.mrb[0].mxu1 %v617_v12 }
 0x221   : > { %2864 = vmatprep.mubr.msk.bf16.mxu1 %vm3570_vm0, %v3569_v14 }
 0x224   : > { %838 = vmatmul.mubr.bf16.gmra.mrb[4].mxu0 %v617_v12 }
 0x225   : > { %2852 = vmatprep.mubr.msk.bf16.mxu0 %vm3570_vm0, %v3569_v14 }
 0x2ef   : > { %v829_v21 = vpop.f32.mrb[0].mxu0 }
 0x2f0   : > { %v831_v23 = vpop.f32.mrb[1].mxu0  ;;  %v830_v26 = vadd.f32 %v829_v21, %v655_v20 }
 0x2f1   : > { %v833_v25 = vpop.f32.mrb[2].mxu0  ;;  %v832_v29 = vadd.f32 %v831_v23, %v659_v22 }
 0x2f2   : > { %v834_v27 = vadd.f32 %v833_v25, %v655_v20  ;;  %v835_v28 = vpop.f32.mrb[3].mxu0 }
 0x2f3   : > { %v836_v30 = vadd.f32 %v835_v28, %v659_v22  ;;  %v2848_v31 = vpop.f32.mrb[0].mxu1 }
 0x2f4   : > { %v897_v32 = vpack.c.bf16 %v834_v27, %v830_v26  ;;  %v891_v33 = vadd.f32 %v2848_v31, %v663_v24  ;;  %v882_v34 = vpop.f32.mrb[1].mxu1 }
 0x2f5   : > { %v898_v35 = vpack.c.bf16 %v836_v30, %v832_v29  ;;  %v2849_v36 = vpop.f32.mrb[2].mxu1  ;;  %v883_v40 = vadd.f32 %v882_v34, %v663_v24 }
 0x2f6   : > { %v894_v37 = vadd.f32 %v2849_v36, %v663_v24  ;;  %1033 = vrot.lane.b32.xlu1 %v897_v32, %s3571_s29  ;;  %v885_v38 = vpop.f32.mrb[3].mxu1 }
 0x2f7   : > { %v886_v41 = vadd.f32 %v885_v38, %v663_v24  ;;  %1036 = vrot.lane.b32.xlu0 %v898_v35, %s3571_s29  ;;  %v839_v42 = vpop.f32.mrb[4].mxu0  ;;  %v915_v43 = vsel %vm910_vm1, %v898_v35, 0 }
 0x2f8   : > { %v3975_v44 = vpack.c.bf16 %v894_v37, %v891_v33  ;;  %v841_v45 = vpop.f32.mrb[5].mxu0  ;;  %2851 = vmatpush3.bf16.xpose.msra.mxu0 %v915_v43  ;;  %v840_v48 = vadd.f32 %v839_v42, %v655_v20 }
 0x2f9   : > { %v3977_v46 = vpack.c.bf16 %v886_v41, %v883_v40  ;;  %v843_v47 = vpop.f32.mrb[6].mxu0  ;;  %2856 = vmatprep.subr.bf16.mxu0 %v3569_v14  ;;  %v842_v51 = vadd.f32 %v841_v45, %v659_v22 }
 0x2fa   : > { %v844_v49 = vadd.f32 %v843_v47, %v655_v20  ;;  %v845_v50 = vpop.f32.mrb[7].mxu0 }
 0x2fb   : > { %v846_v52 = vadd.f32 %v845_v50, %v659_v22 }
 0x2fc   : > { %v900_v53 = vpack.c.bf16 %v844_v49, %v840_v48 }
 0x2fd   : > { %v901_v54 = vpack.c.bf16 %v846_v52, %v842_v51 }
 0x2ff   : > { %2853 = vmatmul.mubr.msk.bf16.vlgmr.msra.gmra.mrb[8].mxu0 %vm910_vm1, %v897_v32  ;;  %1291 = vrot.lane.b32.xlu1 %v901_v54, %s3571_s29  ;;  %v1171_v58 = vsel %vm910_vm1, %v901_v54, 0 }
 0x300   : > { %2857 = vmatpush3.bf16.msra.mxu0 %v3977_v46  ;;  %2858 = vmatprep.mubr.msk.bf16.mxu0 %vm3570_vm0, %v3569_v14 }
 0x301   : > { %2868 = vmatprep.subr.bf16.mxu0 %v3569_v14 }
 0x303   : > { %1288 = vrot.lane.b32.xlu1 %v900_v53, %s3571_s29 }
 0x368   : > { %v1034_v57 = vpop.permute.xlu1 %1033 }
 0x369   : > { %v1037_v55 = vpop.permute.xlu0 %1036 }
 0x36a   : > { %v1042_v56 = vsel %vm910_vm1, %v1037_v55, 0 }
 0x36b   : > { %2863 = vmatpush3.bf16.xpose.msra.mxu1 %v1042_v56 }
 0x36c   : > { %2874 = vmatprep.subr.bf16.mxu1 %v3569_v14 }
 0x371   : > { %v1292_v59 = vpop.permute.xlu1 %1291 }
 0x372   : > { %2865 = vmatmul.mubr.msk.bf16.vlgmr.msra.gmra.mrb[4].mxu1 %vm910_vm1, %v1034_v57  ;;  %v1297_v60 = vsel %vm910_vm1, %v1292_v59, 0 }
 0x373   : > { %2875 = vmatpush3.bf16.xpose.msra.mxu1 %v1171_v58  ;;  %2876 = vmatprep.mubr.msk.bf16.mxu1 %vm3570_vm0, %v3569_v14 }
 0x374   : > { %2886 = vmatprep.subr.bf16.mxu1 %v3569_v14 }
 0x375   : > { %v1289_v61 = vpop.permute.xlu1 %1288 }
 0x37a   : > { %2877 = vmatmul.mubr.msk.bf16.vlgmr.msra.gmra.mrb[8].mxu1 %vm910_vm1, %v900_v53 }
 0x37b   : > { %2887 = vmatpush3.bf16.xpose.msra.mxu1 %v1297_v60  ;;  %2888 = vmatprep.mubr.msk.bf16.mxu1 %vm3570_vm0, %v3569_v14 }
 0x382   : > { %2889 = vmatmul.mubr.msk.bf16.vlgmr.msra.gmra.mrb[12].mxu1 %vm910_vm1, %v1289_v61 }
 0x3d2   : > { %v951_v0 = vpop.f32.mrb[8].mxu0 }
 0x3d3   : > { %v958_v1 = vmul.f32 0.125, %v951_v0  ;;  %v2854_v2 = vpop.f32.mrb[9].mxu0 }
 0x3d4   : > { %v954_v3 = vpop.f32.mrb[10].mxu0 }
 0x3d5   : > { %v959_v4 = vmul.f32 0.125, %v954_v3  ;;  %v2855_v5 = vpop.f32.mrb[11].mxu0  ;;  %v960_v6 = vsel %vm908_vm2, %v958_v1, -1e+09 }
 0x3d6   : > { %v963_v7 = vsel %vm962_vm3, %v960_v6, -inf }
 0x3d7   : > { %964 = vmax.xlane.f32.xlu0 %v963_v7  ;;  %v961_v8 = vsel %vm909_vm4, %v959_v4, -1e+09 }
 0x3d8   : > { %v966_v9 = vsel %vm962_vm3, %v961_v8, -inf }
 0x3d9   : > { %967 = vmax.xlane.f32.xlu1 %v966_v9 }
 0x445   : > { %v1078_v10 = vpop.f32.mrb[4].mxu1 }
 0x446   : > { %v1085_v11 = vmul.f32 0.125, %v1078_v10  ;;  %v2866_v12 = vpop.f32.mrb[5].mxu1 }
 0x447   : > { %v1081_v13 = vpop.f32.mrb[6].mxu1 }
 0x448   : > { %v1086_v17 = vmul.f32 0.125, %v1081_v13  ;;  %v2867_v20 = vpop.f32.mrb[7].mxu1  ;;  %v1087_v21 = vsel %vm908_vm2, %v1085_v11, -1e+09 }
 0x449   : > { %v1089_v22 = vsel %vm962_vm3, %v1087_v21, -inf }
 0x44a   : > { %1090 = vmax.xlane.f32.xlu0 %v1089_v22  ;;  %v1088_v23 = vsel %vm909_vm4, %v1086_v17, -1e+09 }
 0x44b   : > { %v1092_v25 = vsel %vm962_vm3, %v1088_v23, -inf }
 0x44d   : > { %v1207_v24 = vpop.f32.mrb[8].mxu1 }
 0x44e   : > { %v1214_v26 = vmul.f32 0.125, %v1207_v24  ;;  %1093 = vmax.xlane.f32.xlu0 %v1092_v25  ;;  %v2878_v27 = vpop.f32.mrb[9].mxu1 }
 0x44f   : > { %v1210_v28 = vpop.f32.mrb[10].mxu1 }
 0x450   : > { %v1215_v29 = vmul.f32 0.125, %v1210_v28  ;;  %v2879_v30 = vpop.f32.mrb[11].mxu1  ;;  %v1216_v31 = vsel %vm908_vm2, %v1214_v26, -1e+09 }
 0x451   : > { %v1218_v32 = vsel %vm962_vm3, %v1216_v31, -inf }
 0x452   : > { %1219 = vmax.xlane.f32.xlu0 %v1218_v32  ;;  %v1217_v33 = vsel %vm909_vm4, %v1215_v29, -1e+09 }
 0x453   : > { %v1221_v34 = vsel %vm962_vm3, %v1217_v33, -inf }
 0x454   : > { %1222 = vmax.xlane.f32.xlu1 %v1221_v34 }
 0x455   : > { %v1333_v35 = vpop.f32.mrb[12].mxu1 }
 0x456   : > { %v1340_v36 = vmul.f32 0.125, %v1333_v35  ;;  %v2890_v37 = vpop.f32.mrb[13].mxu1 }
 0x457   : > { %v1336_v38 = vpop.f32.mrb[14].mxu1 }
 0x458   : > { %v1341_v40 = vmul.f32 0.125, %v1336_v38  ;;  %v2891_v41 = vpop.f32.mrb[15].mxu1  ;;  %v1342_v42 = vsel %vm908_vm2, %v1340_v36, -1e+09 }
 0x459   : > { %v1344_v43 = vsel %vm962_vm3, %v1342_v42, -inf }
 0x45a   : > { %1345 = vmax.xlane.f32.xlu0 %v1344_v43  ;;  %v1343_v45 = vsel %vm909_vm4, %v1341_v40, -1e+09 }
 0x45b   : > { %v1347_v47 = vsel %vm962_vm3, %v1343_v45, -inf }
 0x45c   : > { %1348 = vmax.xlane.f32.xlu1 %v1347_v47 }
 0x464   : > { %v965_v48 = vpop.xlane.xlu0 %964 }
 0x465   : > { %v969_v49 = vsub.f32 %v960_v6, %v965_v48 }
 0x466   : > { %v968_v50 = vpop.xlane.xlu1 %967 }
 0x467   : > { %v971_v51 = vmul.f32 1.442695, %v969_v49  ;;  %v970_v52 = vsub.f32 %v961_v8, %v968_v50 }
 0x469   : > { %3167 = vpow2.f32 %v971_v51  ;;  %v973_v53 = vmul.f32 1.442695, %v970_v52 }
 0x46b   : > { %3169 = vpow2.f32 %v973_v53 }
 0x473   : > { %v3168_v54 = vpop.eup %3167 }
 0x474   : > { %v975_v55 = vsel %vm962_vm3, %v3168_v54, 0.0 }
 0x475   : > { %v3170_v56 = vpop.eup %3169  ;;  %976 = vadd.xlane.f32.xlu0 %v975_v55 }
 0x476   : > { %v978_v57 = vsel %vm962_vm3, %v3170_v56, 0.0 }
 0x477   : > { %979 = vadd.xlane.f32.xlu1 %v978_v57 }
 0x4d7   : > { %v1091_v58 = vpop.xlane.xlu0 %1090 }
 0x4d8   : > { %v1095_v59 = vsub.f32 %v1087_v21, %v1091_v58 }
 0x4da   : > { %v1097_v60 = vmul.f32 1.442695, %v1095_v59 }
 0x4db   : > { %v1094_v61 = vpop.xlane.xlu0 %1093 }
 0x4dc   : > { %3171 = vpow2.f32 %v1097_v60  ;;  %v1096_v62 = vsub.f32 %v1088_v23, %v1094_v61 }
 0x4de   : > { %v1099_v63 = vmul.f32 1.442695, %v1096_v62 }
 0x4df   : > { %v1220_v0 = vpop.xlane.xlu0 %1219 }
 0x4e0   : > { %3173 = vpow2.f32 %v1099_v63  ;;  %v1224_v1 = vsub.f32 %v1216_v31, %v1220_v0 }
 0x4e1   : > { %v1223_v2 = vpop.xlane.xlu1 %1222 }
 0x4e2   : > { %v1226_v3 = vmul.f32 1.442695, %v1224_v1  ;;  %v1225_v4 = vsub.f32 %v1217_v33, %v1223_v2  ;;  %v3071_v1 = vld [vmem:[#allocation11] sm:$0xff]   ;;  %v3072_v2 = vld [vmem:[#allocation11 + $0x8] sm:$0xff]  }
 0x4e3   : > { %2898 = vmatprep.subr.bf16.mxu1 %v3071_v1 }
 0x4e4   : > { %3175 = vpow2.f32 %v1226_v3  ;;  %v1228_v5 = vmul.f32 1.442695, %v1225_v4  ;;  %2899 = vmatpush3.bf16.msra.mxu1 %v3071_v1  ;;  %v3074_v3 = vld [vmem:[#allocation11 + $0x18] sm:$0xff]   ;;  %v3075_v4 = vld [vmem:[#allocation11 + $0x20] sm:$0xff]  }
 0x4e5   : > { %2900 = vmatprep.subr.bf16.mxu1 %v3072_v2 }
 0x4e6   : > { %v3172_v6 = vpop.eup %3171  ;;  %3177 = vpow2.f32 %v1228_v5 }
 0x4e7   : > { %v1346_v7 = vpop.xlane.xlu0 %1345  ;;  %v1101_v8 = vsel %vm962_vm3, %v3172_v6, 0.0 }
 0x4e8   : > { %v1350_v9 = vsub.f32 %v1342_v42, %v1346_v7  ;;  %1102 = vadd.xlane.f32.xlu0 %v1101_v8  ;;  %2901 = vmatpush3.bf16.msra.mxu1 %v3072_v2 }
 0x4e9   : > { %v1349_v10 = vpop.xlane.xlu1 %1348 }
 0x4ea   : > { %v3174_v11 = vpop.eup %3173  ;;  %v1352_v12 = vmul.f32 1.442695, %v1350_v9  ;;  %v1351_v13 = vsub.f32 %v1343_v45, %v1349_v10 }
 0x4eb   : > { %v1104_v17 = vsel %vm962_vm3, %v3174_v11, 0.0 }
 0x4ec   : > { %3179 = vpow2.f32 %v1352_v12  ;;  %v1354_v20 = vmul.f32 1.442695, %v1351_v13  ;;  %1105 = vadd.xlane.f32.xlu1 %v1104_v17  ;;  %v3078_v13 = vld [vmem:[#allocation11 + $0x38] sm:$0xff]  }
 0x4ee   : > { %v3176_v21 = vpop.eup %3175  ;;  %3181 = vpow2.f32 %v1354_v20 }
 0x4ef   : > { %v1230_v22 = vsel %vm962_vm3, %v3176_v21, 0.0 }
 0x4f0   : > { %v3178_v23 = vpop.eup %3177  ;;  %1231 = vadd.xlane.f32.xlu0 %v1230_v22 }
 0x4f1   : > { %v1233_v24 = vsel %vm962_vm3, %v3178_v23, 0.0 }
 0x4f2   : > { %1234 = vadd.xlane.f32.xlu1 %v1233_v24 }
 0x4f6   : > { %v3180_v25 = vpop.eup %3179 }
 0x4f7   : > { %v1356_v26 = vsel %vm962_vm3, %v3180_v25, 0.0 }
 0x4f8   : > { %v3182_v27 = vpop.eup %3181  ;;  %1357 = vadd.xlane.f32.xlu0 %v1356_v26 }
 0x4f9   : > { %v1359_v28 = vsel %vm962_vm3, %v3182_v27, 0.0 }
 0x4fa   : > { %1360 = vadd.xlane.f32.xlu1 %v1359_v28 }
 0x502   : > { %v977_v29 = vpop.xlane.xlu0 %976 }
 0x503   : > { %3183 = vrcp.f32 %v977_v29 }
 0x504   : > { %v980_v30 = vpop.xlane.xlu1 %979 }
 0x505   : > { %3185 = vrcp.f32 %v980_v30 }
 0x50b   : > { %1368 = vrot.lane.b32.xlu1 %v3975_v44, %s3571_s29 }
 0x50d   : > { %v3184_v31 = vpop.eup %3183 }
 0x50e   : > { %1113 = vrot.lane.b32.xlu0 %v3977_v46, %s3571_s29  ;;  %v983_v33 = vmul.f32 %v3184_v31, %v3168_v54 }
 0x50f   : > { %v3186_v32 = vpop.eup %3185 }
 0x510   : > { %v984_v34 = vmul.f32 %v3186_v32, %v3170_v56  ;;  %v2639_v32 = vld [vmem:[%s4261_s6] ss:$0 sm:$0xff] }
 0x512   : > { %v985_v35 = vpack.c.bf16 %v984_v34, %v983_v33 }
 0x514   : > { %2859 = vmatmul.mubr.msk.bf16.vlgmr.msra.gmra.mrb[12].mxu0 %vm962_vm3, %v985_v35 }
 0x515   : > { %2870 = vmatprep.mubr.msk.bf16.mxu0 %vm3570_vm0, %v3569_v14 }
 0x575   : > { %v1103_v36 = vpop.xlane.xlu0 %1102 }
 0x579   : > { %v1106_v37 = vpop.xlane.xlu1 %1105 }
 0x57a   : > { %3187 = vrcp.f32 %v1106_v37 }
 0x57b   : > { %3189 = vrcp.f32 %v1103_v36 }
 0x57d   : > { %v1232_v40 = vpop.xlane.xlu0 %1231 }
 0x57f   : > { %v1235_v38 = vpop.xlane.xlu1 %1234 }
 0x580   : > { %3191 = vrcp.f32 %v1235_v38 }
 0x581   : > { %3193 = vrcp.f32 %v1232_v40  ;;  %v3271_v40 = vld [vmem:[%s3907_s30] sm:$0xff] }
 0x584   : > { %v3188_v41 = vpop.eup %3187 }
 0x585   : > { %v1358_v42 = vpop.xlane.xlu0 %1357  ;;  %v3190_v46 = vpop.eup %3189  ;;  %v1110_v43 = vmul.f32 %v3188_v41, %v3174_v11  ;;  %v3077_v11 = vld [vmem:[#allocation11 + $0x30] sm:$0xff]  }
 0x586   : > { %v1109_v47 = vmul.f32 %v3190_v46, %v3172_v6  ;;  %v3076_v6 = vld [vmem:[#allocation11 + $0x28] sm:$0xff]  }
 0x587   : > { %v1361_v45 = vpop.xlane.xlu1 %1360  ;;  %v3272_v46 = vld [vmem:[%s3907_s30 + $0x8] sm:$0xff] }
 0x588   : > { %3195 = vrcp.f32 %v1361_v45  ;;  %v1111_v49 = vpack.c.bf16 %v1110_v43, %v1109_v47  ;;  %v3273_v45 = vld [vmem:[%s3907_s30 + $0x10] sm:$0xff] }
 0x589   : > { %v1114_v48 = vpop.permute.xlu0 %1113  ;;  %3197 = vrcp.f32 %v1358_v42 }
 0x58a   : > { %2869 = vmatpush3.bf16.msra.mxu0 %v1114_v48  ;;  %v3192_v50 = vpop.eup %3191 }
 0x58b   : > { %2880 = vmatprep.subr.bf16.mxu0 %v3569_v14  ;;  %v3194_v51 = vpop.eup %3193  ;;  %v1239_v52 = vmul.f32 %v3192_v50, %v3178_v23  ;;  %v1369_v56 = vpop.permute.xlu1 %1368 }
 0x58c   : > { %v1238_v53 = vmul.f32 %v3194_v51, %v3176_v21  ;;  %v3079_v51 = vld [vmem:[#allocation12] ss:$16 sps:$4 sm:$0xff]  }
 0x58d   : > { %2871 = vmatmul.mubr.msk.bf16.vlgmr.msra.gmra.mrb[16].mxu0 %vm962_vm3, %v1111_v49  ;;  %v3274_v49 = vld [vmem:[%s3907_s30 + $0x18] sm:$0xff]  ;;  %s3477_s30 = sshll.u32 %s3572_s14, 4  ;;  %s3478_s30 = int_to_ptr.vmem [resolvable:$false] %s3477_s30 }
 0x58e   : > { %2881 = vmatpush3.bf16.msra.mxu0 %v3975_v44  ;;  %2882 = vmatprep.mubr.msk.bf16.mxu0 %vm3570_vm0, %v3569_v14  ;;  %v1240_v54 = vpack.c.bf16 %v1239_v52, %v1238_v53  ;;  %v3081_v52 = vld [vmem:[#allocation12 + $0x4] ss:$16 sps:$4 sm:$0xff]   ;;  %v3082_v53 = vld [vmem:[#allocation12 + $0x8] ss:$16 sps:$4 sm:$0xff]   ;;  %p3480_p1 = scmp.lt.s32.totalorder %s4204_s12, %s3478_s30 }
 0x58f   : > { %2892 = vmatprep.subr.bf16.mxu0 %v3569_v14 }
 0x592   : > { %v3196_v55 = vpop.eup %3195 }
 0x593   : > { %v3198_v57 = vpop.eup %3197  ;;  %v1365_v58 = vmul.f32 %v3196_v55, %v3182_v27  ;;  %v3087_v55 = vld [vmem:[#allocation12 + $0x24] ss:$16 sps:$4 sm:$0xff]  }
 0x594   : > { %v1364_v59 = vmul.f32 %v3198_v57, %v3180_v25  ;;  %v3085_v57 = vld [vmem:[#allocation12 + $0x20] ss:$16 sps:$4 sm:$0xff]  }
 0x595   : > { %2883 = vmatmul.mubr.msk.bf16.vlgmr.msra.gmra.mrb[20].mxu0 %vm962_vm3, %v1240_v54  ;;  %v3084_v54 = vld [vmem:[#allocation12 + $0xc] ss:$16 sps:$4 sm:$0xff]  }
 0x596   : > { %2893 = vmatpush3.bf16.msra.mxu0 %v1369_v56  ;;  %2894 = vmatprep.mubr.msk.bf16.mxu0 %vm3570_vm0, %v3569_v14  ;;  %v1366_v44 = vpack.c.bf16 %v1365_v58, %v1364_v59  ;;  %v3073_v14 = vld [vmem:[#allocation11 + $0x10] sm:$0xff]   ;;  %v3090_v56 = vld [vmem:[#allocation12 + $0x2c] ss:$16 sps:$4 sm:$0xff]   ;;  %v3088_v58 = vld [vmem:[#allocation12 + $0x28] ss:$16 sps:$4 sm:$0xff]  }
 0x597   : > { %2902 = vmatprep.subr.bf16.mxu1 %v3073_v14  ;;  %1829 = vmatprep.subr.bf16.mxu0 %v3081_v52 }
 0x598   : > { %2903 = vmatpush3.bf16.msra.mxu1 %v3073_v14 }
 0x599   : > { %2904 = vmatprep.subr.bf16.mxu1 %v3074_v3 }
 0x59c   : > { %2905 = vmatpush3.bf16.msra.mxu1 %v3074_v3 }
 0x59d   : > { %2895 = vmatmul.mubr.msk.bf16.vlgmr.msra.gmra.mrb[24].mxu0 %vm962_vm3, %v1366_v44  ;;  %2906 = vmatprep.subr.bf16.mxu1 %v3075_v4 }
 0x59e   : > { %1861 = vmatprep.mubr.bf16.mxu0 %v3568_v39  ;;  %1830 = vmatpush1.bf16.msra.mxu0 %v3079_v51 }
 0x59f   : > { %1831 = vmatprep.subr.bf16.mxu0 %v3087_v55 }
 0x5a0   : > { %2907 = vmatpush3.bf16.msra.mxu1 %v3075_v4 }
 0x5a1   : > { %2908 = vmatprep.subr.bf16.mxu1 %v3076_v6 }
 0x5a2   : > { %1832 = vmatpush1.bf16.msra.mxu0 %v3085_v57  ;;  %v2648_v57 = vld [vmem:[%s4298_s19] ss:$0 sm:$0xff] }
 0x5a4   : > { %2909 = vmatpush3.bf16.msra.mxu1 %v3076_v6 }
 0x5a5   : > { %2910 = vmatprep.subr.bf16.mxu1 %v3077_v11 }
 0x5a8   : > { %2911 = vmatpush3.bf16.msra.mxu1 %v3077_v11  ;;  %v3091_v11 = vld [vmem:[#allocation12 + $0x40] ss:$16 sps:$4 sm:$0xff]  }
 0x5a9   : > { %2912 = vmatprep.subr.bf16.mxu1 %v3078_v13 }
 0x5ac   : > { %2913 = vmatpush3.bf16.msra.mxu1 %v3078_v13  ;;  %v3099_v13 = vld [vmem:[#allocation12 + $0x64] ss:$16 sps:$4 sm:$0xff]  }
 0x5ad   : > { %1882 = vmatprep.subr.bf16.mxu1 %v3084_v54 }
 0x5e7   : > { %v1023_v60 = vpop.f32.mrb[12].mxu0 }
 0x5e8   : > { %v2860_v61 = vpop.f32.mrb[13].mxu0 }
 0x5e9   : > { %v1026_v62 = vpop.f32.mrb[14].mxu0 }
 0x5ea   : > { %v1030_v63 = vpack.c.bf16 %v1026_v62, %v1023_v60  ;;  %v2861_v0 = vpop.f32.mrb[15].mxu0 }
 0x5ec   : > { %1031 = vst.msk [vmem:[#allocation2] sm:$0xff] %vm910_vm1, %v1030_v63 }
 0x660   : > { %v1153_v5 = vpop.f32.mrb[16].mxu0 }
 0x661   : > { %v2872_v7 = vpop.f32.mrb[17].mxu0 }
 0x662   : > { %v1156_v8 = vpop.f32.mrb[18].mxu0 }
 0x663   : > { %v1160_v9 = vpack.c.bf16 %v1156_v8, %v1153_v5  ;;  %v2873_v10 = vpop.f32.mrb[19].mxu0 }
 0x664   : > { %v3096_v10 = vld [vmem:[#allocation12 + $0x4c] ss:$16 sps:$4 sm:$0xff]  }
 0x665   : > { %1162 = vrot.lane.b32.xlu1 %v1160_v9, %s3571_s29  ;;  %v3093_v9 = vld [vmem:[#allocation12 + $0x44] ss:$16 sps:$4 sm:$0xff]  }
 0x666   : > { %1833 = vmatprep.subr.bf16.mxu0 %v3093_v9 }
 0x667   : > { %1834 = vmatpush1.bf16.msra.mxu0 %v3091_v11 }
 0x668   : > { %v1278_v12 = vpop.f32.mrb[20].mxu0  ;;  %1835 = vmatprep.subr.bf16.mxu0 %v3099_v13  ;;  %v3128_v13 = vld [vmem:[#allocation14 + $0xc0] sm:$0xff]  }
 0x669   : > { %v2884_v17 = vpop.f32.mrb[21].mxu0 }
 0x66a   : > { %v1281_v20 = vpop.f32.mrb[22].mxu0  ;;  %v3102_v17 = vld [vmem:[#allocation12 + $0x6c] ss:$16 sps:$4 sm:$0xff]  }
 0x66b   : > { %v1285_v21 = vpack.c.bf16 %v1281_v20, %v1278_v12  ;;  %v2885_v22 = vpop.f32.mrb[23].mxu0  ;;  %v3094_v12 = vld [vmem:[#allocation12 + $0x48] ss:$16 sps:$4 sm:$0xff]   ;;  %v3097_v20 = vld [vmem:[#allocation12 + $0x60] ss:$16 sps:$4 sm:$0xff]  }
 0x66c   : > { %1836 = vmatpush1.bf16.msra.mxu0 %v3097_v20  ;;  %v3105_v22 = vld [vmem:[#allocation12 + $0x84] ss:$16 sps:$4 sm:$0xff]   ;;  %v3132_v20 = vld [vmem:[#allocation14 + $0xc8] sm:$0xff]  }
 0x66d   : > { %1286 = vst.msk [vmem:[#allocation2 + $0x8] sm:$0xff] %vm910_vm1, %v1285_v21  ;;  %v3100_v21 = vld [vmem:[#allocation12 + $0x68] ss:$16 sps:$4 sm:$0xff]   ;;  %1837 = vmatprep.subr.bf16.mxu0 %v3105_v22 }
 0x66e   : > { %v3134_v22 = vld [vmem:[#allocation14 + $0x88] sm:$0xff]  }
 0x670   : > { %v1408_v23 = vpop.f32.mrb[24].mxu0 }
 0x671   : > { %v2896_v24 = vpop.f32.mrb[25].mxu0 }
 0x672   : > { %v1411_v25 = vpop.f32.mrb[26].mxu0  ;;  %v3103_v24 = vld [vmem:[#allocation12 + $0x80] ss:$16 sps:$4 sm:$0xff]  }
 0x673   : > { %v1415_v26 = vpack.c.bf16 %v1411_v25, %v1408_v23  ;;  %v2897_v27 = vpop.f32.mrb[27].mxu0  ;;  %v3108_v23 = vld [vmem:[#allocation12 + $0x8c] ss:$16 sps:$4 sm:$0xff]   ;;  %v3106_v25 = vld [vmem:[#allocation12 + $0x88] ss:$16 sps:$4 sm:$0xff]   ;;  %1838 = vmatpush1.bf16.msra.mxu0 %v3103_v24  ;;  %v3137_v24 = vld [vmem:[#allocation14 + $0x10] sm:$0xff]  }
 0x674   : > { %v3114_v27 = vld [vmem:[#allocation12 + $0xac] ss:$16 sps:$4 sm:$0xff]  }
 0x675   : > { %1417 = vrot.lane.b32.xlu1 %v1415_v26, %s3571_s29  ;;  %v3111_v26 = vld [vmem:[#allocation12 + $0xa4] ss:$16 sps:$4 sm:$0xff]  }
 0x676   : > { %1839 = vmatprep.subr.bf16.mxu0 %v3111_v26  ;;  %v3139_v26 = vld [vmem:[#allocation14 + $0x58] sm:$0xff]  }
 0x6d7   : > { %v1163_v28 = vpop.permute.xlu1 %1162 }
 0x6d8   : > { %1166 = vst.msk [vmem:[#allocation2] sm:$0xff] %vm1165_vm5, %v1163_v28  ;;  %v3109_v28 = vld [vmem:[#allocation12 + $0xa0] ss:$16 sps:$4 sm:$0xff]  }
 0x6d9   : > { %1840 = vmatpush1.bf16.msra.mxu0 %v3109_v28  ;;  %v3141_v28 = vld [vmem:[#allocation14 + $0x18] sm:$0xff]  }
 0x6df   : > { %v1421_v29 = vld [vmem:[#allocation2] sm:$0xff] }
 0x6e0   : > { %2914 = vmatprep.mubr.bf16.mxu1 %v1421_v29  ;;  %v3112_v29 = vld [vmem:[#allocation12 + $0xa8] ss:$16 sps:$4 sm:$0xff]  }
 0x6e7   : > { %v1418_v30 = vpop.permute.xlu1 %1417 }
 0x6e8   : > { %1420 = vst.msk [vmem:[#allocation2 + $0x8] sm:$0xff] %vm1165_vm5, %v1418_v30  ;;  %v3117_v30 = vld [vmem:[#allocation12 + $0xc4] ss:$16 sps:$4 sm:$0xff]  }
 0x6e9   : > { %1841 = vmatprep.subr.bf16.mxu0 %v3117_v30  ;;  %v3143_v30 = vld [vmem:[#allocation14 + $0x60] sm:$0xff]  }
 0x6ef   : > { %v1422_v31 = vld [vmem:[#allocation2 + $0x8] sm:$0xff] }
 0x6f0   : > { %2915 = vmatmul.mubr.bf16.vlgmr.msra.gmra.mrb[16].mxu1 %v1422_v31  ;;  %v3120_v31 = vld [vmem:[#allocation12 + $0xcc] ss:$16 sps:$4 sm:$0xff]  }
 0x6f1   : > { %1914 = vmatprep.mubr.bf16.mxu1 %v3568_v39  ;;  %1883 = vmatpush1.bf16.msra.mxu1 %v3082_v53 }
 0x6f2   : > { %1884 = vmatprep.subr.bf16.mxu1 %v3090_v56 }
 0x6f5   : > { %1885 = vmatpush1.bf16.msra.mxu1 %v3088_v58 }
 0x6f6   : > { %1886 = vmatprep.subr.bf16.mxu1 %v3096_v10 }
 0x6f9   : > { %1887 = vmatpush1.bf16.msra.mxu1 %v3094_v12  ;;  %v3127_v12 = vld [vmem:[#allocation14 + $0x40] sm:$0xff]  }
 0x6fa   : > { %1888 = vmatprep.subr.bf16.mxu1 %v3102_v17  ;;  %v3130_v17 = vld [vmem:[#allocation14 + $0x80] sm:$0xff]  }
 0x6fd   : > { %1889 = vmatpush1.bf16.msra.mxu1 %v3100_v21  ;;  %v3133_v21 = vld [vmem:[#allocation14 + $0x8] sm:$0xff]  }
 0x6fe   : > { %1890 = vmatprep.subr.bf16.mxu1 %v3108_v23  ;;  %v3136_v23 = vld [vmem:[#allocation14 + $0xd0] sm:$0xff]  }
 0x701   : > { %1891 = vmatpush1.bf16.msra.mxu1 %v3106_v25  ;;  %v3138_v25 = vld [vmem:[#allocation14 + $0x90] sm:$0xff]  }
 0x702   : > { %1892 = vmatprep.subr.bf16.mxu1 %v3114_v27  ;;  %v3140_v27 = vld [vmem:[#allocation14 + $0xd8] sm:$0xff]  }
 0x705   : > { %1893 = vmatpush1.bf16.msra.mxu1 %v3112_v29  ;;  %v3142_v29 = vld [vmem:[#allocation14 + $0x98] sm:$0xff]  }
 0x706   : > { %1894 = vmatprep.subr.bf16.mxu1 %v3120_v31  ;;  %v3144_v31 = vld [vmem:[#allocation14 + $0xe0] sm:$0xff]  }
 0x7c3   : > { %v2916_v33 = vpop.f32.mrb[16].mxu1 }
 0x7c4   : > { %v1528_v34 = vpop.f32.mrb[17].mxu1  ;;  %v1537_v38 = vadd.f32 %v2916_v33, %v2639_v32  ;;  %v3118_v33 = vld [vmem:[#allocation12 + $0xc8] ss:$16 sps:$4 sm:$0xff]  }
 0x7c5   : > { %v1529_v35 = vadd.f32 %v2639_v32, %v1528_v34  ;;  %v2917_v36 = vpop.f32.mrb[18].mxu1  ;;  %v3123_v34 = vld [vmem:[#allocation12 + $0xe4] ss:$16 sps:$4 sm:$0xff]   ;;  %1895 = vmatpush1.bf16.msra.mxu1 %v3118_v33 }
 0x7c6   : > { %v1531_v37 = vpop.f32.mrb[19].mxu1  ;;  %v4064_v47 = vadd.f32 %v3273_v45, %v1537_v38  ;;  %v1540_v48 = vadd.f32 %v2917_v36, %v2639_v32  ;;  %v3121_v36 = vld [vmem:[#allocation12 + $0xe0] ss:$16 sps:$4 sm:$0xff]  }
 0x7c7   : > { %v4057_v41 = vadd.f32 %v3271_v40, %v1529_v35  ;;  %v1532_v42 = vadd.f32 %v2639_v32, %v1531_v37  ;;  %v3115_v32 = vld [vmem:[#allocation12 + $0xc0] ss:$16 sps:$4 sm:$0xff]   ;;  %v3126_v35 = vld [vmem:[#allocation12 + $0xec] ss:$16 sps:$4 sm:$0xff]   ;;  %v3124_v37 = vld [vmem:[#allocation12 + $0xe8] ss:$16 sps:$4 sm:$0xff]  }
 0x7c8   : > { %v4069_v50 = vadd.f32 %v3274_v49, %v1540_v48  ;;  %1842 = vmatpush1.bf16.msra.mxu0 %v3115_v32  ;;  %1896 = vmatprep.subr.bf16.mxu1 %v3126_v35  ;;  %v3145_v32 = vld [vmem:[#allocation14 + $0x20] sm:$0xff]   ;;  %v3148_v35 = vld [vmem:[#allocation14 + $0xe8] sm:$0xff]  }
 0x7c9   : > { %v4060_v43 = vadd.f32 %v3272_v46, %v1532_v42  ;;  %1549 = vadd.xlane.f32.xlu0 %v4057_v41  ;;  %1843 = vmatprep.subr.bf16.mxu0 %v3123_v34  ;;  %v3146_v33 = vld [vmem:[#allocation14 + $0xa0] sm:$0xff]   ;;  %v3147_v34 = vld [vmem:[#allocation14 + $0x68] sm:$0xff]  }
 0x7ca   : > { %1897 = vmatpush1.bf16.msra.mxu1 %v3124_v37  ;;  %v3150_v37 = vld [vmem:[#allocation14 + $0xa8] sm:$0xff]  }
 0x7cb   : > { %1551 = vadd.xlane.f32.xlu1 %v4060_v43  ;;  %2802 = vmatprep.subr.bf16.mxu1 %v3128_v13 }
 0x7cc   : > { %1844 = vmatpush1.bf16.msra.mxu0 %v3121_v36  ;;  %v3149_v36 = vld [vmem:[#allocation14 + $0x28] sm:$0xff]  }
 0x7cd   : > { %1553 = vadd.xlane.f32.xlu0 %v4064_v47  ;;  %2774 = vmatprep.subr.bf16.mxu0 %v3127_v12 }
 0x7d1   : > { %1555 = vadd.xlane.f32.xlu0 %v4069_v50 }
 0x856   : > { %v1550_v59 = vpop.xlane.xlu0 %1549 }
 0x857   : > { %v1557_v44 = vmul.f32 0.0078125, %v1550_v59 }
 0x858   : > { %v1552_v60 = vpop.xlane.xlu1 %1551 }
 0x859   : > { %v4073_v61 = vsub.f32 %v4057_v41, %v1557_v44  ;;  %v1558_v62 = vmul.f32 0.0078125, %v1552_v60 }
 0x85a   : > { %v1554_v63 = vpop.xlane.xlu0 %1553 }
 0x85b   : > { %v4076_v0 = vsub.f32 %v4060_v43, %v1558_v62  ;;  %v1559_v1 = vmul.f32 0.0078125, %v1554_v63  ;;  %v1565_v2 = vmul.f32 %v4073_v61, %v4073_v61  ;;  %v2649_v63 = vld [vmem:[%s4299_s8] ss:$0 sm:$0xff]  ;;  %s2441_s8 = scalar_lea.sflag [#allocation5], %s3901_s1 }
 0x85d   : > { %v4081_v14 = vsub.f32 %v4064_v47, %v1559_v1  ;;  %1569 = vadd.xlane.f32.xlu0 %v1565_v2  ;;  %v1566_v3 = vmul.f32 %v4076_v0, %v4076_v0 }
 0x85e   : > { %v1556_v4 = vpop.xlane.xlu0 %1555 }
 0x85f   : > { %v1560_v5 = vmul.f32 0.0078125, %v1556_v4  ;;  %1571 = vadd.xlane.f32.xlu1 %v1566_v3  ;;  %v1567_v6 = vmul.f32 %v4081_v14, %v4081_v14 }
 0x861   : > { %v4088_v7 = vsub.f32 %v4069_v50, %v1560_v5  ;;  %1573 = vadd.xlane.f32.xlu0 %v1567_v6 }
 0x863   : > { %v1568_v8 = vmul.f32 %v4088_v7, %v4088_v7 }
 0x865   : > { %1575 = vadd.xlane.f32.xlu1 %v1568_v8 }
 0x8ea   : > { %v1570_v38 = vpop.xlane.xlu0 %1569 }
 0x8eb   : > { %v1577_v40 = vmul.f32 0.0078125, %v1570_v38  ;;  %v3151_v38 = vld [vmem:[#allocation14 + $0x70] sm:$0xff]  }
 0x8ec   : > { %v1572_v42 = vpop.xlane.xlu1 %1571 }
 0x8ed   : > { %v1581_v46 = vadd.f32 1e-05, %v1577_v40  ;;  %v1578_v45 = vmul.f32 0.0078125, %v1572_v42  ;;  %v3152_v40 = vld [vmem:[#allocation14 + $0xf0] sm:$0xff]  }
 0x8ee   : > { %v1574_v48 = vpop.xlane.xlu0 %1573  ;;  %v3153_v42 = vld [vmem:[#allocation14 + $0x30] sm:$0xff]  }
 0x8ef   : > { %3199 = vrsqrt.f32 %v1581_v46  ;;  %v1582_v49 = vadd.f32 1e-05, %v1578_v45  ;;  %v1579_v51 = vmul.f32 0.0078125, %v1574_v48  ;;  %v3154_v46 = vld [vmem:[#allocation14 + $0xb0] sm:$0xff]   ;;  %v3155_v45 = vld [vmem:[#allocation14 + $0x78] sm:$0xff]  }
 0x8f0   : > { %v3156_v48 = vld [vmem:[#allocation14 + $0xf8] sm:$0xff]  }
 0x8f1   : > { %3201 = vrsqrt.f32 %v1582_v49  ;;  %v1583_v52 = vadd.f32 1e-05, %v1579_v51  ;;  %v3157_v49 = vld [vmem:[#allocation14 + $0x38] sm:$0xff]  }
 0x8f2   : > { %v1576_v53 = vpop.xlane.xlu1 %1575  ;;  %v3158_v51 = vld [vmem:[#allocation14 + $0xb8] sm:$0xff]  }
 0x8f3   : > { %3203 = vrsqrt.f32 %v1583_v52  ;;  %v1580_v54 = vmul.f32 0.0078125, %v1576_v53  ;;  %v1647_v52 = vld [vmem:[%s4300_s15] sm:$0xf]  ;;  %v1663_v53 = vsub.s32 3, %v3958_v15  ;;  %s3479_s15 = scalar_lea.vmem %s3478_s30, 1024 }
 0x8f4   : > { %p3481_p3 = scmp.lt.s32.totalorder %s3479_s15, %s3473_s13 }
 0x8f5   : > { %v1584_v55 = vadd.f32 1e-05, %v1580_v54  ;;  %v1652_v54 = vrot.slane %v1647_v52, %v654_v16 }
 0x8f6   : > { %p3482_p2 = por %p3481_p3, %p3480_p1 }
 0x8f7   : > { %3205 = vrsqrt.f32 %v1584_v55  ;;  %v4112_v55 = vrot.slane %v1647_v52, %v662_v19 }
 0x8f8   : > { %p3483_p8 = pnand %p3482_p2, %p3476_p13 }
 0x8f9   : > { %v3200_v56 = vpop.eup %3199 }
 0x8fa   : > { %v1589_v58 = vmul.f32 %v3200_v56, %v4073_v61  ;;  %v4116_v56 = vrot.slane %v1647_v52, %v658_v18 }
 0x8fb   : > { %v3202_v59 = vpop.eup %3201 }
 0x8fc   : > { %v1590_v44 = vmul.f32 %v3202_v59, %v4076_v0  ;;  %v1599_v60 = vmul.f32 %v2648_v57, %v1589_v58 }
 0x8fd   : > { %v3204_v62 = vpop.eup %3203 }
 0x8fe   : > { %v1600_v1 = vmul.f32 %v2648_v57, %v1590_v44  ;;  %v1609_v2 = vadd.f32 %v2649_v63, %v1599_v60  ;;  %v1591_v4 = vmul.f32 %v3204_v62, %v4081_v14  ;;  %v3129_v14 = vld [vmem:[#allocation14] sm:$0xff]  }
 0x900   : > { %v1610_v3 = vadd.f32 %v2649_v63, %v1600_v1  ;;  %v1601_v61 = vmul.f32 %v2648_v57, %v1591_v4 }
 0x901   : > { %v3206_v5 = vpop.eup %3205 }
 0x902   : > { %v1613_v6 = vpack.c.bf16 %v1610_v3, %v1609_v2  ;;  %v1592_v8 = vmul.f32 %v3206_v5, %v4088_v7  ;;  %v1611_v10 = vadd.f32 %v2649_v63, %v1601_v61  ;;  %v3131_v7 = vld [vmem:[#allocation14 + $0x48] sm:$0xff]  }
 0x904   : > { %1862 = vmatmul.mubr.bf16.vlgmr.msra.gmra.mrb[28].mxu0 %v1613_v6  ;;  %1915 = vmatmul.mubr.bf16.vlgmr.msra.gmra.mrb[20].mxu1 %v1613_v6  ;;  %v1602_v9 = vmul.f32 %v2648_v57, %v1592_v8  ;;  %v4118_v57 = vrot.slane %v1647_v52, %v1663_v53 }
 0x905   : > { %1871 = vmatprep.mubr.bf16.mxu0 %v3568_v39  ;;  %1924 = vmatprep.mubr.bf16.mxu1 %v3568_v39  ;;  %v3135_v39 = vld [vmem:[#allocation14 + $0x50] sm:$0xff]  }
 0x906   : > { %v1612_v0 = vadd.f32 %v2649_v63, %v1602_v9  ;;  %2775 = vmatpush3.bf16.msra.mxu0 %v3129_v14  ;;  %2803 = vmatpush3.bf16.msra.mxu1 %v3130_v17 }
 0x907   : > { %2776 = vmatprep.subr.bf16.mxu0 %v3131_v7  ;;  %2804 = vmatprep.subr.bf16.mxu1 %v3132_v20 }
 0x908   : > { %v1614_v11 = vpack.c.bf16 %v1612_v0, %v1611_v10 }
 0x90a   : > { %2777 = vmatpush3.bf16.msra.mxu0 %v3133_v21  ;;  %2805 = vmatpush3.bf16.msra.mxu1 %v3134_v22 }
 0x90b   : > { %2778 = vmatprep.subr.bf16.mxu0 %v3135_v39  ;;  %2806 = vmatprep.subr.bf16.mxu1 %v3136_v23 }
 0x90c   : > { %1872 = vmatmul.mubr.bf16.gmra.mrb[32].mxu0 %v1614_v11  ;;  %1925 = vmatmul.mubr.bf16.gmra.mrb[24].mxu1 %v1614_v11 }
 0x90e   : > { %2779 = vmatpush3.bf16.msra.mxu0 %v3137_v24  ;;  %2807 = vmatpush3.bf16.msra.mxu1 %v3138_v25 }
 0x90f   : > { %2780 = vmatprep.subr.bf16.mxu0 %v3139_v26  ;;  %2808 = vmatprep.subr.bf16.mxu1 %v3140_v27 }
 0x912   : > { %2781 = vmatpush3.bf16.msra.mxu0 %v3141_v28  ;;  %2809 = vmatpush3.bf16.msra.mxu1 %v3142_v29 }
 0x913   : > { %2782 = vmatprep.subr.bf16.mxu0 %v3143_v30  ;;  %2810 = vmatprep.subr.bf16.mxu1 %v3144_v31 }
 0x916   : > { %2783 = vmatpush3.bf16.msra.mxu0 %v3145_v32  ;;  %2811 = vmatpush3.bf16.msra.mxu1 %v3146_v33 }
 0x917   : > { %2784 = vmatprep.subr.bf16.mxu0 %v3147_v34  ;;  %2812 = vmatprep.subr.bf16.mxu1 %v3148_v35 }
 0x91a   : > { %2785 = vmatpush3.bf16.msra.mxu0 %v3149_v36  ;;  %2813 = vmatpush3.bf16.msra.mxu1 %v3150_v37 }
 0x91b   : > { %2786 = vmatprep.subr.bf16.mxu0 %v3151_v38  ;;  %2814 = vmatprep.subr.bf16.mxu1 %v3152_v40 }
 0x91e   : > { %2787 = vmatpush3.bf16.msra.mxu0 %v3153_v42  ;;  %2815 = vmatpush3.bf16.msra.mxu1 %v3154_v46 }
 0x91f   : > { %2788 = vmatprep.subr.bf16.mxu0 %v3155_v45  ;;  %2816 = vmatprep.subr.bf16.mxu1 %v3156_v48 }
 0x922   : > { %2789 = vmatpush3.bf16.msra.mxu0 %v3157_v49  ;;  %2817 = vmatpush3.bf16.msra.mxu1 %v3158_v51 }
 0x9d7   : > { %v1863_v58 = vpop.f32.mrb[28].mxu0  ;;  %v1916_v59 = vpop.f32.mrb[20].mxu1 }
 0x9d8   : > { %v4120_v44 = vadd.f32 %v1863_v58, %v1652_v54  ;;  %v4123_v60 = vadd.f32 %v1916_v59, %v4112_v55  ;;  %v1865_v62 = vpop.f32.mrb[29].mxu0  ;;  %v1918_v63 = vpop.f32.mrb[21].mxu1 }
 0x9d9   : > { %v4126_v16 = vadd.f32 %v1865_v62, %v4116_v56  ;;  %v4129_v19 = vadd.f32 %v1918_v63, %v4118_v57  ;;  %v1867_v15 = vpop.f32.mrb[30].mxu0  ;;  %v1920_v18 = vpop.f32.mrb[22].mxu1 }
 0x9da   : > { %v2682_v1 = vmul.f32 -1.702, %v4120_v44  ;;  %v2684_v2 = vmul.f32 -1.702, %v4123_v60  ;;  %v4133_v3 = vadd.f32 %v1867_v15, %v1652_v54  ;;  %v4136_v4 = vadd.f32 %v1920_v18, %v4112_v55  ;;  %v1869_v5 = vpop.f32.mrb[31].mxu0  ;;  %v1922_v6 = vpop.f32.mrb[23].mxu1 }
 0x9db   : > { %v2683_v8 = vmul.f32 -1.702, %v4126_v16  ;;  %v2685_v61 = vmul.f32 -1.702, %v4129_v19  ;;  %v4141_v9 = vadd.f32 %v1869_v5, %v4116_v56  ;;  %v4144_v0 = vadd.f32 %v1922_v6, %v4118_v57 }
 0x9dc   : > { %v1967_v10 = vmul.f32 1.442695, %v2682_v1  ;;  %v1971_v11 = vmul.f32 1.442695, %v2684_v2  ;;  %v2686_v12 = vmul.f32 -1.702, %v4133_v3 }
 0x9dd   : > { %v1969_v13 = vmul.f32 1.442695, %v2683_v8  ;;  %v1973_v14 = vmul.f32 1.442695, %v2685_v61  ;;  %v2688_v17 = vmul.f32 -1.702, %v4136_v4 }
 0x9de   : > { %3207 = vpow2.f32 %v1967_v10  ;;  %v1975_v7 = vmul.f32 1.442695, %v2686_v12  ;;  %v2687_v20 = vmul.f32 -1.702, %v4141_v9  ;;  %v2689_v21 = vmul.f32 -1.702, %v4144_v0 }
 0x9df   : > { %3209 = vpow2.f32 %v1971_v11  ;;  %v1979_v22 = vmul.f32 1.442695, %v2688_v17  ;;  %v1873_v39 = vpop.f32.mrb[32].mxu0  ;;  %v1926_v23 = vpop.f32.mrb[24].mxu1 }
 0x9e0   : > { %3211 = vpow2.f32 %v1969_v13  ;;  %v1977_v24 = vmul.f32 1.442695, %v2687_v20  ;;  %v4150_v25 = vadd.f32 %v1873_v39, %v1652_v54  ;;  %v1875_v26 = vpop.f32.mrb[33].mxu0  ;;  %v1928_v27 = vpop.f32.mrb[25].mxu1  ;;  %v1981_v28 = vmul.f32 1.442695, %v2689_v21 }
 0x9e1   : > { %3213 = vpow2.f32 %v1973_v14  ;;  %v4153_v29 = vadd.f32 %v1926_v23, %v4112_v55  ;;  %v4156_v30 = vadd.f32 %v1875_v26, %v4116_v56  ;;  %v1877_v31 = vpop.f32.mrb[34].mxu0  ;;  %v1930_v32 = vpop.f32.mrb[26].mxu1  ;;  %v4165_v49 = vadd.f32 %v1928_v27, %v4118_v57 }
 0x9e2   : > { %3215 = vpow2.f32 %v1975_v7  ;;  %v2690_v33 = vmul.f32 -1.702, %v4150_v25  ;;  %v4159_v34 = vadd.f32 %v1877_v31, %v1652_v54  ;;  %v1879_v35 = vpop.f32.mrb[35].mxu0  ;;  %v1932_v36 = vpop.f32.mrb[27].mxu1  ;;  %v4169_v1 = vadd.f32 %v1930_v32, %v4112_v55 }
 0x9e3   : > { %3217 = vpow2.f32 %v1979_v22  ;;  %v2692_v37 = vmul.f32 -1.702, %v4153_v29  ;;  %v2691_v38 = vmul.f32 -1.702, %v4156_v30  ;;  %v2693_v63 = vmul.f32 -1.702, %v4165_v49 }
 0x9e4   : > { %3219 = vpow2.f32 %v1977_v24  ;;  %v1983_v40 = vmul.f32 1.442695, %v2690_v33  ;;  %v2694_v42 = vmul.f32 -1.702, %v4159_v34  ;;  %v4172_v6 = vadd.f32 %v1879_v35, %v4116_v56 }
 0x9e5   : > { %3221 = vpow2.f32 %v1981_v28  ;;  %v1987_v46 = vmul.f32 1.442695, %v2692_v37  ;;  %v1985_v45 = vmul.f32 1.442695, %v2691_v38  ;;  %v4175_v10 = vadd.f32 %v1932_v36, %v4118_v57 }
 0x9e6   : > { %3223 = vpow2.f32 %v1983_v40  ;;  %v1991_v48 = vmul.f32 1.442695, %v2694_v42  ;;  %v1989_v13 = vmul.f32 1.442695, %v2693_v63  ;;  %v2696_v17 = vmul.f32 -1.702, %v4169_v1 }
 0x9e7   : > { %3225 = vpow2.f32 %v1987_v46  ;;  %v2695_v56 = vmul.f32 -1.702, %v4172_v6  ;;  %v2697_v21 = vmul.f32 -1.702, %v4175_v10 }
 0x9e8   : > { %v3208_v51 = vpop.eup %3207  ;;  %3227 = vpow2.f32 %v1985_v45  ;;  %v1995_v39 = vmul.f32 1.442695, %v2696_v17 }
 0x9e9   : > { %v3210_v52 = vpop.eup %3209  ;;  %v1999_v53 = vadd.f32 1.0, %v3208_v51  ;;  %3229 = vpow2.f32 %v1991_v48  ;;  %v1993_v26 = vmul.f32 1.442695, %v2695_v56  ;;  %v1997_v28 = vmul.f32 1.442695, %v2697_v21 }
 0x9ea   : > { %v3212_v54 = vpop.eup %3211  ;;  %v2001_v58 = vadd.f32 1.0, %v3210_v52 }
 0x9eb   : > { %v3214_v59 = vpop.eup %3213  ;;  %3231 = vrcp.f32 %v1999_v53  ;;  %v2000_v62 = vadd.f32 1.0, %v3212_v54 }
 0x9ec   : > { %v3216_v15 = vpop.eup %3215  ;;  %3233 = vrcp.f32 %v2001_v58  ;;  %v2002_v18 = vadd.f32 1.0, %v3214_v59 }
 0x9ed   : > { %v3218_v2 = vpop.eup %3217  ;;  %3235 = vrcp.f32 %v2000_v62  ;;  %v2003_v5 = vadd.f32 1.0, %v3216_v15 }
 0x9ee   : > { %v3220_v8 = vpop.eup %3219  ;;  %3237 = vrcp.f32 %v2002_v18  ;;  %v2005_v61 = vadd.f32 1.0, %v3218_v2 }
 0x9ef   : > { %v3222_v11 = vpop.eup %3221  ;;  %3239 = vrcp.f32 %v2003_v5  ;;  %v2004_v12 = vadd.f32 1.0, %v3220_v8 }
 0x9f0   : > { %v3224_v14 = vpop.eup %3223  ;;  %3241 = vrcp.f32 %v2005_v61  ;;  %v2006_v55 = vadd.f32 1.0, %v3222_v11 }
 0x9f1   : > { %3243 = vrcp.f32 %v2004_v12  ;;  %v2007_v7 = vadd.f32 1.0, %v3224_v14  ;;  %v3226_v20 = vpop.eup %3225 }
 0x9f2   : > { %3245 = vrcp.f32 %v2006_v55  ;;  %v3228_v22 = vpop.eup %3227  ;;  %v2009_v58 = vadd.f32 1.0, %v3226_v20 }
 0x9f3   : > { %3247 = vpow2.f32 %v1989_v13  ;;  %v3230_v57 = vpop.eup %3229  ;;  %v2008_v62 = vadd.f32 1.0, %v3228_v22 }
 0x9f4   : > { %3249 = vrcp.f32 %v2007_v7  ;;  %v2011_v24 = vadd.f32 1.0, %v3230_v57 }
 0x9f5   : > { %v3232_v23 = vpop.eup %3231 }
 0x9f6   : > { %v3234_v27 = vpop.eup %3233  ;;  %3251 = vrcp.f32 %v2011_v24  ;;  %v2047_v36 = vmul.f32 %v3232_v23, %v4120_v44 }
 0x9f7   : > { %v3236_v31 = vpop.eup %3235  ;;  %3253 = vpow2.f32 %v1995_v39  ;;  %v2049_v40 = vmul.f32 %v3234_v27, %v4123_v60 }
 0x9f8   : > { %v3238_v32 = vpop.eup %3237  ;;  %3255 = vpow2.f32 %v1993_v26  ;;  %v2048_v45 = vmul.f32 %v3236_v31, %v4126_v16 }
 0x9f9   : > { %v3240_v33 = vpop.eup %3239  ;;  %3257 = vpow2.f32 %v1997_v28  ;;  %v2050_v53 = vmul.f32 %v3238_v32, %v4129_v19 }
 0x9fa   : > { %v3242_v35 = vpop.eup %3241  ;;  %v2051_v37 = vmul.f32 %v3240_v33, %v4133_v3  ;;  %3259 = vrcp.f32 %v2009_v58 }
 0x9fb   : > { %v3244_v38 = vpop.eup %3243  ;;  %v2053_v42 = vmul.f32 %v3242_v35, %v4136_v4  ;;  %3261 = vrcp.f32 %v2008_v62 }
 0x9fc   : > { %v3246_v46 = vpop.eup %3245  ;;  %v2063_v48 = vpack.c.bf16 %v2051_v37, %v2047_v36  ;;  %v2052_v51 = vmul.f32 %v3244_v38, %v4141_v9 }
 0x9fd   : > { %v3248_v52 = vpop.eup %3247  ;;  %v2065_v54 = vpack.c.bf16 %v2053_v42, %v2049_v40  ;;  %v2054_v44 = vmul.f32 %v3246_v46, %v4144_v0 }
 0x9fe   : > { %v2064_v3 = vpack.c.bf16 %v2052_v51, %v2048_v45  ;;  %v3250_v59 = vpop.eup %3249  ;;  %v2010_v60 = vadd.f32 1.0, %v3248_v52 }
 0x9ff   : > { %v2066_v63 = vpack.c.bf16 %v2054_v44, %v2050_v53  ;;  %v2055_v15 = vmul.f32 %v3250_v59, %v4150_v25 }
 0xa00   : > { %2366 = vmatprep.mubr.bf16.mxu0 %v2064_v3  ;;  %v3252_v4 = vpop.eup %3251  ;;  %3263 = vrcp.f32 %v2010_v60 }
 0xa01   : > { %2415 = vmatprep.mubr.bf16.mxu1 %v2066_v63  ;;  %2367 = vmatmul.mubr.bf16.vlgmr.msra.gmra.mrb[36].mxu0 %v2063_v48  ;;  %v3254_v16 = vpop.eup %3253  ;;  %v2059_v9 = vmul.f32 %v3252_v4, %v4159_v34 }
 0xa02   : > { %2416 = vmatmul.mubr.bf16.vlgmr.msra.gmra.mrb[28].mxu1 %v2065_v54  ;;  %v3256_v19 = vpop.eup %3255  ;;  %v2013_v0 = vadd.f32 1.0, %v3254_v16 }
 0xa03   : > { %v3258_v18 = vpop.eup %3257  ;;  %v2012_v2 = vadd.f32 1.0, %v3256_v19  ;;  %v2067_v5 = vpack.c.bf16 %v2059_v9, %v2055_v15 }
 0xa04   : > { %3265 = vrcp.f32 %v2013_v0  ;;  %v2014_v8 = vadd.f32 1.0, %v3258_v18  ;;  %v3260_v61 = vpop.eup %3259 }
 0xa05   : > { %3267 = vrcp.f32 %v2012_v2  ;;  %v3262_v11 = vpop.eup %3261  ;;  %v2057_v14 = vmul.f32 %v3260_v61, %v4153_v29 }
 0xa06   : > { %3269 = vrcp.f32 %v2014_v8  ;;  %v2056_v17 = vmul.f32 %v3262_v11, %v4156_v30 }
 0xa0a   : > { %v3264_v12 = vpop.eup %3263 }
 0xa0b   : > { %v2058_v56 = vmul.f32 %v3264_v12, %v4165_v49 }
 0xa0e   : > { %v3266_v13 = vpop.eup %3265 }
 0xa0f   : > { %v3268_v25 = vpop.eup %3267  ;;  %v2061_v34 = vmul.f32 %v3266_v13, %v4169_v1  ;;  %v2698_v1 = vld [vmem:[%s4301_s21] ss:$0 sm:$0xff] }
 0xa10   : > { %v3270_v55 = vpop.eup %3269  ;;  %v2060_v7 = vmul.f32 %v3268_v25, %v4172_v6 }
 0xa11   : > { %v2062_v20 = vmul.f32 %v3270_v55, %v4175_v10  ;;  %v2069_v21 = vpack.c.bf16 %v2061_v34, %v2057_v14 }
 0xa12   : > { %v2068_v22 = vpack.c.bf16 %v2060_v7, %v2056_v17 }
 0xa13   : > { %v2070_v57 = vpack.c.bf16 %v2062_v20, %v2058_v56 }
 0xa14   : > { %2374 = vmatprep.mubr.bf16.mxu0 %v2068_v22 }
 0xa15   : > { %2423 = vmatprep.mubr.bf16.mxu1 %v2070_v57  ;;  %2375 = vmatmul.mubr.bf16.gmra.mrb[40].mxu0 %v2067_v5 }
 0xa16   : > { %2424 = vmatmul.mubr.bf16.gmra.mrb[32].mxu1 %v2069_v21 }
 0xad4   : > { %v2790_v39 = vpop.f32.mrb[36].mxu0 }
 0xad5   : > { %v2818_v29 = vpop.f32.mrb[28].mxu1  ;;  %v2791_v30 = vpop.f32.mrb[37].mxu0 }
 0xad6   : > { %v2792_v6 = vadd.f32 %v2791_v30, %v2790_v39  ;;  %v2819_v23 = vpop.f32.mrb[29].mxu1  ;;  %v2793_v49 = vpop.f32.mrb[38].mxu0 }
 0xad7   : > { %v2820_v24 = vadd.f32 %v2819_v23, %v2818_v29  ;;  %v2821_v10 = vpop.f32.mrb[30].mxu1  ;;  %v2794_v26 = vpop.f32.mrb[39].mxu0 }
 0xad8   : > { %v2369_v27 = vadd.f32 %v2792_v6, %v2698_v1  ;;  %v2795_v28 = vadd.f32 %v2794_v26, %v2793_v49  ;;  %v2822_v31 = vpop.f32.mrb[31].mxu1 }
 0xad9   : > { %v2823_v32 = vadd.f32 %v2822_v31, %v2821_v10 }
 0xada   : > { %v2418_v33 = vadd.f32 %v2820_v24, %v2369_v27  ;;  %v2372_v35 = vadd.f32 %v2795_v28, %v2698_v1 }
 0xadc   : > { %v2432_v36 = vadd.f32 %v2418_v33, %v4057_v41  ;;  %v2421_v37 = vadd.f32 %v2823_v32, %v2372_v35 }
 0xade   : > { %2436 = vst [vmem:[%s541_s22] sm:$0xff] %v2432_v36  ;;  %v2433_v38 = vadd.f32 %v2421_v37, %v4060_v43 }
 0xae0   : > { %2437 = vst [vmem:[%s541_s22 + $0x8] sm:$0xff] %v2433_v38 }
 0xae8   : > { %v2796_v40 = vpop.f32.mrb[40].mxu0 }
 0xae9   : > { %v2824_v42 = vpop.f32.mrb[32].mxu1  ;;  %v2797_v46 = vpop.f32.mrb[41].mxu0 }
 0xaea   : > { %v2798_v45 = vadd.f32 %v2797_v46, %v2796_v40  ;;  %v2825_v48 = vpop.f32.mrb[33].mxu1  ;;  %v2799_v51 = vpop.f32.mrb[42].mxu0 }
 0xaeb   : > { %v2826_v52 = vadd.f32 %v2825_v48, %v2824_v42  ;;  %v2827_v53 = vpop.f32.mrb[34].mxu1  ;;  %v2800_v54 = vpop.f32.mrb[43].mxu0 }
 0xaec   : > { %v2377_v44 = vadd.f32 %v2798_v45, %v2698_v1  ;;  %v2801_v41 = vadd.f32 %v2800_v54, %v2799_v51  ;;  %v2828_v58 = vpop.f32.mrb[35].mxu1 }
 0xaed   : > { %v2829_v3 = vadd.f32 %v2828_v58, %v2827_v53 }
 0xaee   : > { %v2426_v59 = vadd.f32 %v2826_v52, %v2377_v44  ;;  %v2380_v43 = vadd.f32 %v2801_v41, %v2698_v1 }
 0xaf0   : > { %v2434_v62 = vadd.f32 %v2426_v59, %v4064_v47  ;;  %v2429_v63 = vadd.f32 %v2829_v3, %v2380_v43 }
 0xaf2   : > { %2438 = vst [vmem:[%s541_s22 + $0x10] sm:$0xff] %v2434_v62  ;;  %v2435_v60 = vadd.f32 %v2429_v63, %v4069_v50 }
 0xaf4   : > { %2439 = vst [vmem:[%s541_s22 + $0x18] sm:$0xff] %v2435_v60 }
 0xaf5   : > { %3486 = shalt.err (!%p3483_p8)
}
 0xaf6   : > { %s3487_s24 = scalar_lea.hbm %s4210_s17, 512  ;;  %s3491_s22 = scalar_lea.hbm %s4302_s20, 1024 }
 0xaf7   : > { %p3488_p10 = scmp.ne.s32.totalorder %s4210_s17, %s3487_s24  ;;  %p3492_p0 = scmp.lt.u32.totalorder %s4210_s17, %s4302_s20 }
 0xaf8   : > { %p3493_p5 = scmp.lt.u32.totalorder %s3491_s22, %s3487_s24  ;;  %p3495_p6 = scmp.lt.u32.totalorder %s3487_s24, %s4210_s17 }
 0xaf9   : > { %p3489_p11 = pnand %p3488_p10, %p4303_p9 }
 0xafa   : > { %p3494_p7 = por %p3493_p5, %p3492_p0 }
 0xafb   : > { %p3490_p12 = pneg %p3489_p11 }
 0xafc   : > { %p3496_p4 = por %p3495_p6, %p3494_p7 }
 0xafe   : > { %p3497_p13 = pnand %p3496_p4, %p3490_p12 }
 0xb00   : > { %3500 = shalt.err (!%p3497_p13)
}
 0xb01   : > { %s3573_s19 = smov 128   ;;  %s3574_s13 = smov 8  }
 0xb02   : > { %2944 = dma.vmem_to_hbm [thread:$0]  (%p4303_p9), %s4204_s12, 512, %s4210_s17, %s2441_s8, %s3573_s19, %s3573_s19, %s3574_s13  }
 0xb03 PF: > { %s2469_s14 = sand.u32 1, %s3539_s25   ;;  %p4304_p1 = scmp.ne.s32.totalorder %s4289_s7, 0 }
 0xb04   : > { %p4305_p3 = scmp.ge.s32.totalorder %s3551_s28, 2  ;;  %s2470_s30 = scalar_lea.sflag [#allocation5], %s2469_s14 }
 0xb06   : > { %p2970_p2 = pnand %p4305_p3, %p4304_p1 }
 0xb08   : > { %3534 = dma.done.wait (!%p2970_p2), %s2470_s30, 512  }
 0xb09   : > { %3536 = vsyncadd (!%p2970_p2), %s2470_s30, 4294966784  ;;  %p29_p8 = scmp.ge.s32.totalorder %s3822_s18, 4   ;;  %s4306_s25 = smov %s3543_s26 }
 0xb0a   : > { %s4307_s26 = smov %s3547_s27  ;;  %s4308_s27 = smov %s3833_s10 }
 0xb0b   : > { %s4309_s28 = smov %s3822_s18  ;;  %31 = sbr.rel (!%p29_p8) target bundleno = 16 (0x10), region = 141 }
 0xb12   :  { %2475 = vsyncpa [#allocation4], 1 }
 0xb13   :  { %2477 = vsyncpa [#allocation4 + $0x1], 1 }
 0xb14   :  { %2478 = vsyncpa [#allocation7], 1 }
 0xb15   :  { %2479 = vsyncpa [#allocation10], 1 }
 0xb16   :  { %2480 = vsyncpa [#allocation13], 1 }
 0xb17   :  { %2481 = vsyncpa [#allocation5], 1 }
 0xb18   :  { %2483 = vsyncpa [#allocation5 + $0x1], 1 }

</bundles_post_ra>
